<compile_context>
chip_gen: v5e
topology: v5e:2x2
jax: 0.10.0
libtpu: 0.0.40
codegen_flags: <defaults>
</compile_context>

<pallas_src>
import functools

import jax
import jax.numpy as jnp
from jax.experimental import pallas as pl
from jax.experimental.pallas import tpu as pltpu

HIDDEN_SIZE = 32
INPUT_SIZE = 1
NUM_LAYERS = 1
OUTPUT_SIZE = 1

_SUBLANE = 8
_MAX_TIME_CHUNK = 256   # per-chunk VMEM ≈ Tt * 8 KiB (x tile + hseq tile), double-buffered
_UNROLL = 8


def _lstm_chunk_kernel(x_ref, wih_ref, bias_ref, whh_ref, h0_ref, c0_ref,
                       hseq_ref, hfin_ref, cfin_ref, *, t_total, mask_tail):
    """One time-chunk of the LSTM recurrence.

    x_ref:    (Tt, Bp, 1)  raw inputs for this chunk
    wih_ref:  (1, 4H)      input-projection row (gate order [i,f,o,g], I==1)
    bias_ref: (1, 4H)      fused bias b_ih + b_hh (permuted)
    whh_ref:  (H, 4H)      W_hh^T (permuted)
    h0_ref:   (Bp, H)      initial hidden state
    c0_ref:   (Bp, H)      initial cell state
    hseq_ref: (Tt, Bp, H)  per-step hidden states for this chunk (output)
    hfin_ref: (Bp, H)      final hidden state (resident output == carry)
    cfin_ref: (Bp, H)      final cell state  (resident output == carry)
    """
    Tt, Bp, _ = x_ref.shape
    H = h0_ref.shape[1]
    chunk = pl.program_id(0)

    @pl.when(chunk == 0)
    def _():
        hfin_ref[...] = h0_ref[...]
        cfin_ref[...] = c0_ref[...]

    # Hoist loop-invariant loads / broadcasts out of the recurrence.
    whh = whh_ref[...]                                       # (H, 4H)
    wih = jnp.broadcast_to(wih_ref[...], (Bp, 4 * H))        # (Bp, 4H)
    bias = jnp.broadcast_to(bias_ref[...], (Bp, 4 * H))      # (Bp, 4H)
    t_base = chunk * Tt

    def step(i, carry):
        h, c = carry
        x_t = x_ref[i]                                       # (Bp, 1)
        gates = (x_t * wih + bias
                 + jnp.dot(h, whh,
                           preferred_element_type=jnp.float32,
                           precision=jax.lax.Precision.HIGHEST))
        # Full-vreg transcendentals (unused lanes are free on the EUP slot);
        # gate layout is [ i | f | o | g ].
        sig = jax.nn.sigmoid(gates)
        tnh = jnp.tanh(gates)
        i_g = sig[:, 0 * H:1 * H]
        f_g = sig[:, 1 * H:2 * H]
        o_g = sig[:, 2 * H:3 * H]
        g_g = tnh[:, 3 * H:4 * H]
        c_new = f_g * c + i_g * g_g
        h_new = o_g * jnp.tanh(c_new)
        if mask_tail:  # static flag: only emitted when T was padded
            valid = (t_base + i) < t_total
            h_new = jnp.where(valid, h_new, h)
            c_new = jnp.where(valid, c_new, c)
        hseq_ref[i] = h_new
        return h_new, c_new

    h_last, c_last = jax.lax.fori_loop(
        0, Tt, step, (hfin_ref[...], cfin_ref[...]),
        unroll=max(1, min(_UNROLL, Tt)))
    hfin_ref[...] = h_last
    cfin_ref[...] = c_last


def lstm_forward(x, h0, c0, params, *, max_time_chunk=_MAX_TIME_CHUNK):
    """x: (B, T, 1) float32, h0/c0: (num_layers=1, B, H).
    Returns (out (B, T, O), (h_n, c_n)) matching the PyTorch module."""
    B, T, I = x.shape
    assert I == INPUT_SIZE == 1, "kernel fuses the I==1 input projection"
    H = HIDDEN_SIZE
    hp = jax.lax.Precision.HIGHEST

    w_ih, w_hh, b_ih, b_hh, w_out, b_out = (
        params["w_ih"], params["w_hh"], params["b_ih"], params["b_hh"],
        params["w_out"], params["b_out"])

    # Permute PyTorch gate order [i, f, g, o] -> [i, f, o, g].
    def permute_gates(w):
        return jnp.concatenate([w[:2 * H], w[3 * H:], w[2 * H:3 * H]], axis=0)

    w_ih_p = permute_gates(w_ih.astype(jnp.float32))            # (4H, 1)
    w_hh_p = permute_gates(w_hh.astype(jnp.float32))            # (4H, H)
    bias_p = permute_gates((b_ih + b_hh).astype(jnp.float32))   # (4H,)

    wih_row = jnp.transpose(w_ih_p)                             # (1, 4H)
    bias_row = bias_p[None, :]                                  # (1, 4H)
    whh_t = jnp.transpose(w_hh_p)                               # (H, 4H)

    x_tm = jnp.transpose(x, (1, 0, 2)).astype(jnp.float32)      # (T, B, 1) - tiny
    h0_2d = h0[0].astype(jnp.float32)                           # (B, H)
    c0_2d = c0[0].astype(jnp.float32)                           # (B, H)

    # Pad batch to a sublane multiple; pad time to a multiple of the chunk.
    Bp = ((B + _SUBLANE - 1) // _SUBLANE) * _SUBLANE
    n_chunks = -(-T // max_time_chunk)
    Tt = -(-T // n_chunks)                                      # <= max_time_chunk
    Tp = Tt * n_chunks
    if Bp != B or Tp != T:
        x_tm = jnp.pad(x_tm, ((0, Tp - T), (0, Bp - B), (0, 0)))
        h0_2d = jnp.pad(h0_2d, ((0, Bp - B), (0, 0)))
        c0_2d = jnp.pad(c0_2d, ((0, Bp - B), (0, 0)))

    kernel = functools.partial(_lstm_chunk_kernel,
                               t_total=T, mask_tail=(Tp != T))

    h_seq, h_n, c_n = pl.pallas_call(
        kernel,
        out_shape=(
            jax.ShapeDtypeStruct((Tp, Bp, H), jnp.float32),
            jax.ShapeDtypeStruct((Bp, H), jnp.float32),
            jax.ShapeDtypeStruct((Bp, H), jnp.float32),
        ),
        grid=(n_chunks,),
        in_specs=[
            pl.BlockSpec((Tt, Bp, 1), lambda t: (t, 0, 0)),     # x chunk
            pl.BlockSpec((1, 4 * H), lambda t: (0, 0)),         # w_ih row
            pl.BlockSpec((1, 4 * H), lambda t: (0, 0)),         # fused bias
            pl.BlockSpec((H, 4 * H), lambda t: (0, 0)),         # W_hh^T
            pl.BlockSpec((Bp, H), lambda t: (0, 0)),            # h0
            pl.BlockSpec((Bp, H), lambda t: (0, 0)),            # c0
        ],
        out_specs=(
            pl.BlockSpec((Tt, Bp, H), lambda t: (t, 0, 0)),     # h sequence chunk
            pl.BlockSpec((Bp, H), lambda t: (0, 0)),            # h_n (resident carry)
            pl.BlockSpec((Bp, H), lambda t: (0, 0)),            # c_n (resident carry)
        ),
        compiler_params=pltpu.CompilerParams(
            dimension_semantics=("arbitrary",)),
    )(x_tm, wih_row, bias_row, whh_t, h0_2d, c0_2d)

    h_seq = h_seq[:T, :B]                                       # (T, B, H)
    h_n = h_n[:B]
    c_n = c_n[:B]

    # Hoisted O=1 output head: one dense matmul; only the tiny (T,B,1) result
    # is transposed back to batch-major.
    out_tb = (jnp.dot(h_seq, jnp.transpose(w_out.astype(jnp.float32)),
                      precision=hp)
              + b_out.astype(jnp.float32))                      # (T, B, O)
    out = jnp.transpose(out_tb, (1, 0, 2))                      # (B, T, O)
    return out, (h_n[None, :, :], c_n[None, :, :])
    # TODO(synk): for large batches, add a leading "parallel" batch-tile grid
    # axis to shard the recurrence across v7x's two TensorCores.


def _reference_forward(x, h0, c0, params):
    """Pure-JAX reference (matches torch.nn.LSTM + Linear semantics)."""
    H = HIDDEN_SIZE
    hp = jax.lax.Precision.HIGHEST
    w_ih, w_hh = params["w_ih"], params["w_hh"]
    b = params["b_ih"] + params["b_hh"]
    w_out, b_out = params["w_out"], params["b_out"]

    def step(carry, x_t):
        h, c = carry
        gates = (jnp.dot(x_t, w_ih.T, precision=hp)
                 + jnp.dot(h, w_hh.T, precision=hp) + b)
        i = jax.nn.sigmoid(gates[:, 0 * H:1 * H])
        f = jax.nn.sigmoid(gates[:, 1 * H:2 * H])
        g = jnp.tanh(gates[:, 2 * H:3 * H])
        o = jax.nn.sigmoid(gates[:, 3 * H:4 * H])
        c_new = f * c + i * g
        h_new = o * jnp.tanh(c_new)
        y = jnp.dot(h_new, w_out.T, precision=hp) + b_out
        return (h_new, c_new), y

    (h_n, c_n), ys = jax.lax.scan(step, (h0[0], c0[0]),
                                  jnp.transpose(x, (1, 0, 2)))
    return jnp.transpose(ys, (1, 0, 2)), (h_n[None], c_n[None])


def init_params(key):
    H, I, O = HIDDEN_SIZE, INPUT_SIZE, OUTPUT_SIZE
    ks = jax.random.split(key, 6)
    bound = 1.0 / jnp.sqrt(H)
    u = lambda k, shape: jax.random.uniform(k, shape, jnp.float32, -bound, bound)
    return {
        "w_ih": u(ks[0], (4 * H, I)),
        "w_hh": u(ks[1], (4 * H, H)),
        "b_ih": u(ks[2], (4 * H,)),
        "b_hh": u(ks[3], (4 * H,)),
        "w_out": u(ks[4], (O, H)),
        "b_out": u(ks[5], (O,)),
    }


if __name__ == "__main__":
    key = jax.random.PRNGKey(0)
    k_p, k_x, k_h, k_c = jax.random.split(key, 4)
    params = init_params(k_p)

    # Primary check: module-sized inputs (batch=2, seq=8, input=1).
    B, T = 2, 8
    x = jax.random.normal(k_x, (B, T, INPUT_SIZE), jnp.float32)
    h0 = jax.random.normal(k_h, (NUM_LAYERS, B, HIDDEN_SIZE), jnp.float32)
    c0 = jax.random.normal(k_c, (NUM_LAYERS, B, HIDDEN_SIZE), jnp.float32)

    out, (h_n, c_n) = lstm_forward(x, h0, c0, params)
    jax.block_until_ready((out, h_n, c_n))

    out_ref, (h_ref, c_ref) = _reference_forward(x, h0, c0, params)
    assert out.shape == (B, T, OUTPUT_SIZE)
    assert h_n.shape == (NUM_LAYERS, B, HIDDEN_SIZE)
    assert c_n.shape == (NUM_LAYERS, B, HIDDEN_SIZE)
    assert jnp.allclose(out, out_ref, atol=1e-5), "output mismatch"
    assert jnp.allclose(h_n, h_ref, atol=1e-5), "h_n mismatch"
    assert jnp.allclose(c_n, c_ref, atol=1e-5), "c_n mismatch"

    # Secondary check: exercise the multi-chunk pipelined grid + tail masking
    # + batch padding (3 chunks of 7 steps covering T=19, batch padded 3->8).
    B2, T2 = 3, 19
    x2 = jax.random.normal(jax.random.PRNGKey(1), (B2, T2, INPUT_SIZE), jnp.float32)
    h02 = jax.random.normal(jax.random.PRNGKey(2), (NUM_LAYERS, B2, HIDDEN_SIZE), jnp.float32)
    c02 = jax.random.normal(jax.random.PRNGKey(3), (NUM_LAYERS, B2, HIDDEN_SIZE), jnp.float32)
    out2, (h_n2, c_n2) = lstm_forward(x2, h02, c02, params, max_time_chunk=8)
    jax.block_until_ready((out2, h_n2, c_n2))
    out2_ref, (h2_ref, c2_ref) = _reference_forward(x2, h02, c02, params)
    assert jnp.allclose(out2, out2_ref, atol=1e-5), "chunked output mismatch"
    assert jnp.allclose(h_n2, h2_ref, atol=1e-5), "chunked h_n mismatch"
    assert jnp.allclose(c_n2, c2_ref, atol=1e-5), "chunked c_n mismatch"

    print("KERNEL_OK")
</pallas_src>

<mosaic_0001>
module attributes {stable_mosaic.version = 11 : i64} {
  func.func @_lstm_chunk_kernel(%arg0: i32, %arg1: memref<8x8x1xf32, #tpu.memory_space<vmem>>, %arg2: memref<1x128xf32, #tpu.memory_space<vmem>>, %arg3: memref<1x128xf32, #tpu.memory_space<vmem>>, %arg4: memref<32x128xf32, #tpu.memory_space<vmem>>, %arg5: memref<8x32xf32, #tpu.memory_space<vmem>>, %arg6: memref<8x32xf32, #tpu.memory_space<vmem>>, %arg7: memref<8x8x32xf32, #tpu.memory_space<vmem>>, %arg8: memref<8x32xf32, #tpu.memory_space<vmem>>, %arg9: memref<8x32xf32, #tpu.memory_space<vmem>>) attributes {dimension_semantics = [#tpu.dimension_semantics<arbitrary>], iteration_bounds = array<i64: 1>, scalar_prefetch = 0 : i64, scratch_operands = 0 : i64, tpu.core_type = #tpu.core_type<tc>, window_params = [{transform_indices = @transform_0, window_bounds = array<i64: 8, 8, 1>}, {pipeline_mode = #tpu.pipeline_mode<synchronous>, transform_indices = @transform_1, window_bounds = array<i64: 1, 128>}, {pipeline_mode = #tpu.pipeline_mode<synchronous>, transform_indices = @transform_2, window_bounds = array<i64: 1, 128>}, {pipeline_mode = #tpu.pipeline_mode<synchronous>, transform_indices = @transform_3, window_bounds = array<i64: 32, 128>}, {pipeline_mode = #tpu.pipeline_mode<synchronous>, transform_indices = @transform_4, window_bounds = array<i64: 8, 32>}, {pipeline_mode = #tpu.pipeline_mode<synchronous>, transform_indices = @transform_5, window_bounds = array<i64: 8, 32>}, {transform_indices = @transform_6, window_bounds = array<i64: 8, 8, 32>}, {pipeline_mode = #tpu.pipeline_mode<synchronous>, transform_indices = @transform_7, window_bounds = array<i64: 8, 32>}, {pipeline_mode = #tpu.pipeline_mode<synchronous>, transform_indices = @transform_8, window_bounds = array<i64: 8, 32>}]} {
    %c0_i32 = arith.constant 0 : i32
    %0 = arith.cmpi eq, %arg0, %c0_i32 : i32
    %1 = arith.extui %0 : i1 to i32
    %c0_i32_0 = arith.constant 0 : i32
    %2 = arith.cmpi ne, %1, %c0_i32_0 : i32
    scf.if %2 {
      %c0_62 = arith.constant 0 : index
      %c0_63 = arith.constant 0 : index
      %230 = vector.load %arg5[%c0_62, %c0_63] : memref<8x32xf32, #tpu.memory_space<vmem>>, vector<8x32xf32>
      %c0_64 = arith.constant 0 : index
      %c0_65 = arith.constant 0 : index
      %231 = vector.load %arg8[%c0_64, %c0_65] : memref<8x32xf32, #tpu.memory_space<vmem>>, vector<8x32xf32>
      tpu.vector_store %arg8[%c0_64, %c0_65], %230 {strides = array<i32>} : memref<8x32xf32, #tpu.memory_space<vmem>>, vector<8x32xf32>,
      %c0_66 = arith.constant 0 : index
      %c0_67 = arith.constant 0 : index
      %232 = vector.load %arg6[%c0_66, %c0_67] : memref<8x32xf32, #tpu.memory_space<vmem>>, vector<8x32xf32>
      %c0_68 = arith.constant 0 : index
      %c0_69 = arith.constant 0 : index
      %233 = vector.load %arg9[%c0_68, %c0_69] : memref<8x32xf32, #tpu.memory_space<vmem>>, vector<8x32xf32>
      tpu.vector_store %arg9[%c0_68, %c0_69], %232 {strides = array<i32>} : memref<8x32xf32, #tpu.memory_space<vmem>>, vector<8x32xf32>,
    } else {
    }
    %c0 = arith.constant 0 : index
    %c0_1 = arith.constant 0 : index
    %3 = vector.load %arg4[%c0, %c0_1] : memref<32x128xf32, #tpu.memory_space<vmem>>, vector<32x128xf32>
    %c0_2 = arith.constant 0 : index
    %c0_3 = arith.constant 0 : index
    %4 = vector.load %arg2[%c0_2, %c0_3] : memref<1x128xf32, #tpu.memory_space<vmem>>, vector<1x128xf32>
    %5 = vector.shape_cast %4 : vector<1x128xf32> to vector<1x128xf32>
    %6 = vector.broadcast %5 : vector<1x128xf32> to vector<8x128xf32>
    %c0_4 = arith.constant 0 : index
    %c0_5 = arith.constant 0 : index
    %7 = vector.load %arg3[%c0_4, %c0_5] : memref<1x128xf32, #tpu.memory_space<vmem>>, vector<1x128xf32>
    %8 = vector.shape_cast %7 : vector<1x128xf32> to vector<1x128xf32>
    %9 = vector.broadcast %8 : vector<1x128xf32> to vector<8x128xf32>
    %c0_6 = arith.constant 0 : index
    %c0_7 = arith.constant 0 : index
    %10 = vector.load %arg8[%c0_6, %c0_7] : memref<8x32xf32, #tpu.memory_space<vmem>>, vector<8x32xf32>
    %c0_8 = arith.constant 0 : index
    %c0_9 = arith.constant 0 : index
    %11 = vector.load %arg9[%c0_8, %c0_9] : memref<8x32xf32, #tpu.memory_space<vmem>>, vector<8x32xf32>
    %c0_i32_10 = arith.constant 0 : i32
    %12 = arith.index_cast %c0_i32_10 : i32 to index
    %c0_11 = arith.constant 0 : index
    %c0_12 = arith.constant 0 : index
    %13 = vector.load %arg1[%12, %c0_11, %c0_12] : memref<8x8x1xf32, #tpu.memory_space<vmem>>, vector<1x8x1xf32>
    %14 = vector.shape_cast %13 : vector<1x8x1xf32> to vector<8x1xf32>
    %15 = vector.broadcast %14 : vector<8x1xf32> to vector<8x128xf32>
    %16 = arith.mulf %15, %6 : vector<8x128xf32>
    %17 = arith.addf %16, %9 : vector<8x128xf32>
    %cst = arith.constant dense<0.000000e+00> : vector<8x128xf32>
    %18 = tpu.matmul %10, %3, %cst {dimension_numbers = #tpu.dot_dimension_numbers<[1], [0], [0], [1], [0, 0, 1, 1], [], []>, precision = #tpu.contract_precision<fp32>} : vector<8x32xf32>, vector<32x128xf32>, vector<8x128xf32> -> vector<8x128xf32>
    %19 = arith.addf %17, %18 : vector<8x128xf32>
    %20 = arith.negf %19 : vector<8x128xf32>
    %21 = math.exp %20 : vector<8x128xf32>
    %cst_13 = arith.constant 1.000000e+00 : f32
    %22 = vector.broadcast %cst_13 : f32 to vector<8x128xf32>
    %23 = arith.addf %22, %21 : vector<8x128xf32>
    %24 = arith.divf %22, %23 : vector<8x128xf32>
    %25 = math.tanh %19 : vector<8x128xf32>
    %26 = vector.extract_strided_slice %24 {offsets = [0, 0], sizes = [8, 32], strides = [1, 1]} : vector<8x128xf32> to vector<8x32xf32>
    %27 = vector.extract_strided_slice %24 {offsets = [0, 32], sizes = [8, 32], strides = [1, 1]} : vector<8x128xf32> to vector<8x32xf32>
    %28 = vector.extract_strided_slice %24 {offsets = [0, 64], sizes = [8, 32], strides = [1, 1]} : vector<8x128xf32> to vector<8x32xf32>
    %29 = vector.extract_strided_slice %25 {offsets = [0, 96], sizes = [8, 32], strides = [1, 1]} : vector<8x128xf32> to vector<8x32xf32>
    %30 = arith.mulf %27, %11 : vector<8x32xf32>
    %31 = arith.mulf %26, %29 : vector<8x32xf32>
    %32 = arith.addf %30, %31 : vector<8x32xf32>
    %33 = math.tanh %32 : vector<8x32xf32>
    %34 = arith.mulf %28, %33 : vector<8x32xf32>
    %35 = arith.index_cast %c0_i32_10 : i32 to index
    %c0_14 = arith.constant 0 : index
    %c0_15 = arith.constant 0 : index
    %36 = vector.load %arg7[%35, %c0_14, %c0_15] : memref<8x8x32xf32, #tpu.memory_space<vmem>>, vector<1x8x32xf32>
    %37 = vector.shape_cast %36 : vector<1x8x32xf32> to vector<8x32xf32>
    %38 = vector.shape_cast %34 : vector<8x32xf32> to vector<1x8x32xf32>
    tpu.vector_store %arg7[%35, %c0_14, %c0_15], %38 {strides = array<i32>} : memref<8x8x32xf32, #tpu.memory_space<vmem>>, vector<1x8x32xf32>,
    %c1_i32 = arith.constant 1 : i32
    %39 = arith.index_cast %c1_i32 : i32 to index
    %c0_16 = arith.constant 0 : index
    %c0_17 = arith.constant 0 : index
    %40 = vector.load %arg1[%39, %c0_16, %c0_17] : memref<8x8x1xf32, #tpu.memory_space<vmem>>, vector<1x8x1xf32>
    %41 = vector.shape_cast %40 : vector<1x8x1xf32> to vector<8x1xf32>
    %42 = vector.broadcast %41 : vector<8x1xf32> to vector<8x128xf32>
    %43 = arith.mulf %42, %6 : vector<8x128xf32>
    %44 = arith.addf %43, %9 : vector<8x128xf32>
    %cst_18 = arith.constant dense<0.000000e+00> : vector<8x128xf32>
    %45 = tpu.matmul %34, %3, %cst_18 {dimension_numbers = #tpu.dot_dimension_numbers<[1], [0], [0], [1], [0, 0, 1, 1], [], []>, precision = #tpu.contract_precision<fp32>} : vector<8x32xf32>, vector<32x128xf32>, vector<8x128xf32> -> vector<8x128xf32>
    %46 = arith.addf %44, %45 : vector<8x128xf32>
    %47 = arith.negf %46 : vector<8x128xf32>
    %48 = math.exp %47 : vector<8x128xf32>
    %cst_19 = arith.constant 1.000000e+00 : f32
    %49 = vector.broadcast %cst_19 : f32 to vector<8x128xf32>
    %50 = arith.addf %49, %48 : vector<8x128xf32>
    %51 = arith.divf %49, %50 : vector<8x128xf32>
    %52 = math.tanh %46 : vector<8x128xf32>
    %53 = vector.extract_strided_slice %51 {offsets = [0, 0], sizes = [8, 32], strides = [1, 1]} : vector<8x128xf32> to vector<8x32xf32>
    %54 = vector.extract_strided_slice %51 {offsets = [0, 32], sizes = [8, 32], strides = [1, 1]} : vector<8x128xf32> to vector<8x32xf32>
    %55 = vector.extract_strided_slice %51 {offsets = [0, 64], sizes = [8, 32], strides = [1, 1]} : vector<8x128xf32> to vector<8x32xf32>
    %56 = vector.extract_strided_slice %52 {offsets = [0, 96], sizes = [8, 32], strides = [1, 1]} : vector<8x128xf32> to vector<8x32xf32>
    %57 = arith.mulf %54, %32 : vector<8x32xf32>
    %58 = arith.mulf %53, %56 : vector<8x32xf32>
    %59 = arith.addf %57, %58 : vector<8x32xf32>
    %60 = math.tanh %59 : vector<8x32xf32>
    %61 = arith.mulf %55, %60 : vector<8x32xf32>
    %62 = arith.index_cast %c1_i32 : i32 to index
    %c0_20 = arith.constant 0 : index
    %c0_21 = arith.constant 0 : index
    %63 = vector.load %arg7[%62, %c0_20, %c0_21] : memref<8x8x32xf32, #tpu.memory_space<vmem>>, vector<1x8x32xf32>
    %64 = vector.shape_cast %63 : vector<1x8x32xf32> to vector<8x32xf32>
    %65 = vector.shape_cast %61 : vector<8x32xf32> to vector<1x8x32xf32>
    tpu.vector_store %arg7[%62, %c0_20, %c0_21], %65 {strides = array<i32>} : memref<8x8x32xf32, #tpu.memory_space<vmem>>, vector<1x8x32xf32>,
    %c2_i32 = arith.constant 2 : i32
    %66 = arith.index_cast %c2_i32 : i32 to index
    %c0_22 = arith.constant 0 : index
    %c0_23 = arith.constant 0 : index
    %67 = vector.load %arg1[%66, %c0_22, %c0_23] : memref<8x8x1xf32, #tpu.memory_space<vmem>>, vector<1x8x1xf32>
    %68 = vector.shape_cast %67 : vector<1x8x1xf32> to vector<8x1xf32>
    %69 = vector.broadcast %68 : vector<8x1xf32> to vector<8x128xf32>
    %70 = arith.mulf %69, %6 : vector<8x128xf32>
    %71 = arith.addf %70, %9 : vector<8x128xf32>
    %cst_24 = arith.constant dense<0.000000e+00> : vector<8x128xf32>
    %72 = tpu.matmul %61, %3, %cst_24 {dimension_numbers = #tpu.dot_dimension_numbers<[1], [0], [0], [1], [0, 0, 1, 1], [], []>, precision = #tpu.contract_precision<fp32>} : vector<8x32xf32>, vector<32x128xf32>, vector<8x128xf32> -> vector<8x128xf32>
    %73 = arith.addf %71, %72 : vector<8x128xf32>
    %74 = arith.negf %73 : vector<8x128xf32>
    %75 = math.exp %74 : vector<8x128xf32>
    %cst_25 = arith.constant 1.000000e+00 : f32
    %76 = vector.broadcast %cst_25 : f32 to vector<8x128xf32>
    %77 = arith.addf %76, %75 : vector<8x128xf32>
    %78 = arith.divf %76, %77 : vector<8x128xf32>
    %79 = math.tanh %73 : vector<8x128xf32>
    %80 = vector.extract_strided_slice %78 {offsets = [0, 0], sizes = [8, 32], strides = [1, 1]} : vector<8x128xf32> to vector<8x32xf32>
    %81 = vector.extract_strided_slice %78 {offsets = [0, 32], sizes = [8, 32], strides = [1, 1]} : vector<8x128xf32> to vector<8x32xf32>
    %82 = vector.extract_strided_slice %78 {offsets = [0, 64], sizes = [8, 32], strides = [1, 1]} : vector<8x128xf32> to vector<8x32xf32>
    %83 = vector.extract_strided_slice %79 {offsets = [0, 96], sizes = [8, 32], strides = [1, 1]} : vector<8x128xf32> to vector<8x32xf32>
    %84 = arith.mulf %81, %59 : vector<8x32xf32>
    %85 = arith.mulf %80, %83 : vector<8x32xf32>
    %86 = arith.addf %84, %85 : vector<8x32xf32>
    %87 = math.tanh %86 : vector<8x32xf32>
    %88 = arith.mulf %82, %87 : vector<8x32xf32>
    %89 = arith.index_cast %c2_i32 : i32 to index
    %c0_26 = arith.constant 0 : index
    %c0_27 = arith.constant 0 : index
    %90 = vector.load %arg7[%89, %c0_26, %c0_27] : memref<8x8x32xf32, #tpu.memory_space<vmem>>, vector<1x8x32xf32>
    %91 = vector.shape_cast %90 : vector<1x8x32xf32> to vector<8x32xf32>
    %92 = vector.shape_cast %88 : vector<8x32xf32> to vector<1x8x32xf32>
    tpu.vector_store %arg7[%89, %c0_26, %c0_27], %92 {strides = array<i32>} : memref<8x8x32xf32, #tpu.memory_space<vmem>>, vector<1x8x32xf32>,
    %c3_i32 = arith.constant 3 : i32
    %93 = arith.index_cast %c3_i32 : i32 to index
    %c0_28 = arith.constant 0 : index
    %c0_29 = arith.constant 0 : index
    %94 = vector.load %arg1[%93, %c0_28, %c0_29] : memref<8x8x1xf32, #tpu.memory_space<vmem>>, vector<1x8x1xf32>
    %95 = vector.shape_cast %94 : vector<1x8x1xf32> to vector<8x1xf32>
    %96 = vector.broadcast %95 : vector<8x1xf32> to vector<8x128xf32>
    %97 = arith.mulf %96, %6 : vector<8x128xf32>
    %98 = arith.addf %97, %9 : vector<8x128xf32>
    %cst_30 = arith.constant dense<0.000000e+00> : vector<8x128xf32>
    %99 = tpu.matmul %88, %3, %cst_30 {dimension_numbers = #tpu.dot_dimension_numbers<[1], [0], [0], [1], [0, 0, 1, 1], [], []>, precision = #tpu.contract_precision<fp32>} : vector<8x32xf32>, vector<32x128xf32>, vector<8x128xf32> -> vector<8x128xf32>
    %100 = arith.addf %98, %99 : vector<8x128xf32>
    %101 = arith.negf %100 : vector<8x128xf32>
    %102 = math.exp %101 : vector<8x128xf32>
    %cst_31 = arith.constant 1.000000e+00 : f32
    %103 = vector.broadcast %cst_31 : f32 to vector<8x128xf32>
    %104 = arith.addf %103, %102 : vector<8x128xf32>
    %105 = arith.divf %103, %104 : vector<8x128xf32>
    %106 = math.tanh %100 : vector<8x128xf32>
    %107 = vector.extract_strided_slice %105 {offsets = [0, 0], sizes = [8, 32], strides = [1, 1]} : vector<8x128xf32> to vector<8x32xf32>
    %108 = vector.extract_strided_slice %105 {offsets = [0, 32], sizes = [8, 32], strides = [1, 1]} : vector<8x128xf32> to vector<8x32xf32>
    %109 = vector.extract_strided_slice %105 {offsets = [0, 64], sizes = [8, 32], strides = [1, 1]} : vector<8x128xf32> to vector<8x32xf32>
    %110 = vector.extract_strided_slice %106 {offsets = [0, 96], sizes = [8, 32], strides = [1, 1]} : vector<8x128xf32> to vector<8x32xf32>
    %111 = arith.mulf %108, %86 : vector<8x32xf32>
    %112 = arith.mulf %107, %110 : vector<8x32xf32>
    %113 = arith.addf %111, %112 : vector<8x32xf32>
    %114 = math.tanh %113 : vector<8x32xf32>
    %115 = arith.mulf %109, %114 : vector<8x32xf32>
    %116 = arith.index_cast %c3_i32 : i32 to index
    %c0_32 = arith.constant 0 : index
    %c0_33 = arith.constant 0 : index
    %117 = vector.load %arg7[%116, %c0_32, %c0_33] : memref<8x8x32xf32, #tpu.memory_space<vmem>>, vector<1x8x32xf32>
    %118 = vector.shape_cast %117 : vector<1x8x32xf32> to vector<8x32xf32>
    %119 = vector.shape_cast %115 : vector<8x32xf32> to vector<1x8x32xf32>
    tpu.vector_store %arg7[%116, %c0_32, %c0_33], %119 {strides = array<i32>} : memref<8x8x32xf32, #tpu.memory_space<vmem>>, vector<1x8x32xf32>,
    %c4_i32 = arith.constant 4 : i32
    %120 = arith.index_cast %c4_i32 : i32 to index
    %c0_34 = arith.constant 0 : index
    %c0_35 = arith.constant 0 : index
    %121 = vector.load %arg1[%120, %c0_34, %c0_35] : memref<8x8x1xf32, #tpu.memory_space<vmem>>, vector<1x8x1xf32>
    %122 = vector.shape_cast %121 : vector<1x8x1xf32> to vector<8x1xf32>
    %123 = vector.broadcast %122 : vector<8x1xf32> to vector<8x128xf32>
    %124 = arith.mulf %123, %6 : vector<8x128xf32>
    %125 = arith.addf %124, %9 : vector<8x128xf32>
    %cst_36 = arith.constant dense<0.000000e+00> : vector<8x128xf32>
    %126 = tpu.matmul %115, %3, %cst_36 {dimension_numbers = #tpu.dot_dimension_numbers<[1], [0], [0], [1], [0, 0, 1, 1], [], []>, precision = #tpu.contract_precision<fp32>} : vector<8x32xf32>, vector<32x128xf32>, vector<8x128xf32> -> vector<8x128xf32>
    %127 = arith.addf %125, %126 : vector<8x128xf32>
    %128 = arith.negf %127 : vector<8x128xf32>
    %129 = math.exp %128 : vector<8x128xf32>
    %cst_37 = arith.constant 1.000000e+00 : f32
    %130 = vector.broadcast %cst_37 : f32 to vector<8x128xf32>
    %131 = arith.addf %130, %129 : vector<8x128xf32>
    %132 = arith.divf %130, %131 : vector<8x128xf32>
    %133 = math.tanh %127 : vector<8x128xf32>
    %134 = vector.extract_strided_slice %132 {offsets = [0, 0], sizes = [8, 32], strides = [1, 1]} : vector<8x128xf32> to vector<8x32xf32>
    %135 = vector.extract_strided_slice %132 {offsets = [0, 32], sizes = [8, 32], strides = [1, 1]} : vector<8x128xf32> to vector<8x32xf32>
    %136 = vector.extract_strided_slice %132 {offsets = [0, 64], sizes = [8, 32], strides = [1, 1]} : vector<8x128xf32> to vector<8x32xf32>
    %137 = vector.extract_strided_slice %133 {offsets = [0, 96], sizes = [8, 32], strides = [1, 1]} : vector<8x128xf32> to vector<8x32xf32>
    %138 = arith.mulf %135, %113 : vector<8x32xf32>
    %139 = arith.mulf %134, %137 : vector<8x32xf32>
    %140 = arith.addf %138, %139 : vector<8x32xf32>
    %141 = math.tanh %140 : vector<8x32xf32>
    %142 = arith.mulf %136, %141 : vector<8x32xf32>
    %143 = arith.index_cast %c4_i32 : i32 to index
    %c0_38 = arith.constant 0 : index
    %c0_39 = arith.constant 0 : index
    %144 = vector.load %arg7[%143, %c0_38, %c0_39] : memref<8x8x32xf32, #tpu.memory_space<vmem>>, vector<1x8x32xf32>
    %145 = vector.shape_cast %144 : vector<1x8x32xf32> to vector<8x32xf32>
    %146 = vector.shape_cast %142 : vector<8x32xf32> to vector<1x8x32xf32>
    tpu.vector_store %arg7[%143, %c0_38, %c0_39], %146 {strides = array<i32>} : memref<8x8x32xf32, #tpu.memory_space<vmem>>, vector<1x8x32xf32>,
    %c5_i32 = arith.constant 5 : i32
    %147 = arith.index_cast %c5_i32 : i32 to index
    %c0_40 = arith.constant 0 : index
    %c0_41 = arith.constant 0 : index
    %148 = vector.load %arg1[%147, %c0_40, %c0_41] : memref<8x8x1xf32, #tpu.memory_space<vmem>>, vector<1x8x1xf32>
    %149 = vector.shape_cast %148 : vector<1x8x1xf32> to vector<8x1xf32>
    %150 = vector.broadcast %149 : vector<8x1xf32> to vector<8x128xf32>
    %151 = arith.mulf %150, %6 : vector<8x128xf32>
    %152 = arith.addf %151, %9 : vector<8x128xf32>
    %cst_42 = arith.constant dense<0.000000e+00> : vector<8x128xf32>
    %153 = tpu.matmul %142, %3, %cst_42 {dimension_numbers = #tpu.dot_dimension_numbers<[1], [0], [0], [1], [0, 0, 1, 1], [], []>, precision = #tpu.contract_precision<fp32>} : vector<8x32xf32>, vector<32x128xf32>, vector<8x128xf32> -> vector<8x128xf32>
    %154 = arith.addf %152, %153 : vector<8x128xf32>
    %155 = arith.negf %154 : vector<8x128xf32>
    %156 = math.exp %155 : vector<8x128xf32>
    %cst_43 = arith.constant 1.000000e+00 : f32
    %157 = vector.broadcast %cst_43 : f32 to vector<8x128xf32>
    %158 = arith.addf %157, %156 : vector<8x128xf32>
    %159 = arith.divf %157, %158 : vector<8x128xf32>
    %160 = math.tanh %154 : vector<8x128xf32>
    %161 = vector.extract_strided_slice %159 {offsets = [0, 0], sizes = [8, 32], strides = [1, 1]} : vector<8x128xf32> to vector<8x32xf32>
    %162 = vector.extract_strided_slice %159 {offsets = [0, 32], sizes = [8, 32], strides = [1, 1]} : vector<8x128xf32> to vector<8x32xf32>
    %163 = vector.extract_strided_slice %159 {offsets = [0, 64], sizes = [8, 32], strides = [1, 1]} : vector<8x128xf32> to vector<8x32xf32>
    %164 = vector.extract_strided_slice %160 {offsets = [0, 96], sizes = [8, 32], strides = [1, 1]} : vector<8x128xf32> to vector<8x32xf32>
    %165 = arith.mulf %162, %140 : vector<8x32xf32>
    %166 = arith.mulf %161, %164 : vector<8x32xf32>
    %167 = arith.addf %165, %166 : vector<8x32xf32>
    %168 = math.tanh %167 : vector<8x32xf32>
    %169 = arith.mulf %163, %168 : vector<8x32xf32>
    %170 = arith.index_cast %c5_i32 : i32 to index
    %c0_44 = arith.constant 0 : index
    %c0_45 = arith.constant 0 : index
    %171 = vector.load %arg7[%170, %c0_44, %c0_45] : memref<8x8x32xf32, #tpu.memory_space<vmem>>, vector<1x8x32xf32>
    %172 = vector.shape_cast %171 : vector<1x8x32xf32> to vector<8x32xf32>
    %173 = vector.shape_cast %169 : vector<8x32xf32> to vector<1x8x32xf32>
    tpu.vector_store %arg7[%170, %c0_44, %c0_45], %173 {strides = array<i32>} : memref<8x8x32xf32, #tpu.memory_space<vmem>>, vector<1x8x32xf32>,
    %c6_i32 = arith.constant 6 : i32
    %174 = arith.index_cast %c6_i32 : i32 to index
    %c0_46 = arith.constant 0 : index
    %c0_47 = arith.constant 0 : index
    %175 = vector.load %arg1[%174, %c0_46, %c0_47] : memref<8x8x1xf32, #tpu.memory_space<vmem>>, vector<1x8x1xf32>
    %176 = vector.shape_cast %175 : vector<1x8x1xf32> to vector<8x1xf32>
    %177 = vector.broadcast %176 : vector<8x1xf32> to vector<8x128xf32>
    %178 = arith.mulf %177, %6 : vector<8x128xf32>
    %179 = arith.addf %178, %9 : vector<8x128xf32>
    %cst_48 = arith.constant dense<0.000000e+00> : vector<8x128xf32>
    %180 = tpu.matmul %169, %3, %cst_48 {dimension_numbers = #tpu.dot_dimension_numbers<[1], [0], [0], [1], [0, 0, 1, 1], [], []>, precision = #tpu.contract_precision<fp32>} : vector<8x32xf32>, vector<32x128xf32>, vector<8x128xf32> -> vector<8x128xf32>
    %181 = arith.addf %179, %180 : vector<8x128xf32>
    %182 = arith.negf %181 : vector<8x128xf32>
    %183 = math.exp %182 : vector<8x128xf32>
    %cst_49 = arith.constant 1.000000e+00 : f32
    %184 = vector.broadcast %cst_49 : f32 to vector<8x128xf32>
    %185 = arith.addf %184, %183 : vector<8x128xf32>
    %186 = arith.divf %184, %185 : vector<8x128xf32>
    %187 = math.tanh %181 : vector<8x128xf32>
    %188 = vector.extract_strided_slice %186 {offsets = [0, 0], sizes = [8, 32], strides = [1, 1]} : vector<8x128xf32> to vector<8x32xf32>
    %189 = vector.extract_strided_slice %186 {offsets = [0, 32], sizes = [8, 32], strides = [1, 1]} : vector<8x128xf32> to vector<8x32xf32>
    %190 = vector.extract_strided_slice %186 {offsets = [0, 64], sizes = [8, 32], strides = [1, 1]} : vector<8x128xf32> to vector<8x32xf32>
    %191 = vector.extract_strided_slice %187 {offsets = [0, 96], sizes = [8, 32], strides = [1, 1]} : vector<8x128xf32> to vector<8x32xf32>
    %192 = arith.mulf %189, %167 : vector<8x32xf32>
    %193 = arith.mulf %188, %191 : vector<8x32xf32>
    %194 = arith.addf %192, %193 : vector<8x32xf32>
    %195 = math.tanh %194 : vector<8x32xf32>
    %196 = arith.mulf %190, %195 : vector<8x32xf32>
    %197 = arith.index_cast %c6_i32 : i32 to index
    %c0_50 = arith.constant 0 : index
    %c0_51 = arith.constant 0 : index
    %198 = vector.load %arg7[%197, %c0_50, %c0_51] : memref<8x8x32xf32, #tpu.memory_space<vmem>>, vector<1x8x32xf32>
    %199 = vector.shape_cast %198 : vector<1x8x32xf32> to vector<8x32xf32>
    %200 = vector.shape_cast %196 : vector<8x32xf32> to vector<1x8x32xf32>
    tpu.vector_store %arg7[%197, %c0_50, %c0_51], %200 {strides = array<i32>} : memref<8x8x32xf32, #tpu.memory_space<vmem>>, vector<1x8x32xf32>,
    %c7_i32 = arith.constant 7 : i32
    %201 = arith.index_cast %c7_i32 : i32 to index
    %c0_52 = arith.constant 0 : index
    %c0_53 = arith.constant 0 : index
    %202 = vector.load %arg1[%201, %c0_52, %c0_53] : memref<8x8x1xf32, #tpu.memory_space<vmem>>, vector<1x8x1xf32>
    %203 = vector.shape_cast %202 : vector<1x8x1xf32> to vector<8x1xf32>
    %204 = vector.broadcast %203 : vector<8x1xf32> to vector<8x128xf32>
    %205 = arith.mulf %204, %6 : vector<8x128xf32>
    %206 = arith.addf %205, %9 : vector<8x128xf32>
    %cst_54 = arith.constant dense<0.000000e+00> : vector<8x128xf32>
    %207 = tpu.matmul %196, %3, %cst_54 {dimension_numbers = #tpu.dot_dimension_numbers<[1], [0], [0], [1], [0, 0, 1, 1], [], []>, precision = #tpu.contract_precision<fp32>} : vector<8x32xf32>, vector<32x128xf32>, vector<8x128xf32> -> vector<8x128xf32>
    %208 = arith.addf %206, %207 : vector<8x128xf32>
    %209 = arith.negf %208 : vector<8x128xf32>
    %210 = math.exp %209 : vector<8x128xf32>
    %cst_55 = arith.constant 1.000000e+00 : f32
    %211 = vector.broadcast %cst_55 : f32 to vector<8x128xf32>
    %212 = arith.addf %211, %210 : vector<8x128xf32>
    %213 = arith.divf %211, %212 : vector<8x128xf32>
    %214 = math.tanh %208 : vector<8x128xf32>
    %215 = vector.extract_strided_slice %213 {offsets = [0, 0], sizes = [8, 32], strides = [1, 1]} : vector<8x128xf32> to vector<8x32xf32>
    %216 = vector.extract_strided_slice %213 {offsets = [0, 32], sizes = [8, 32], strides = [1, 1]} : vector<8x128xf32> to vector<8x32xf32>
    %217 = vector.extract_strided_slice %213 {offsets = [0, 64], sizes = [8, 32], strides = [1, 1]} : vector<8x128xf32> to vector<8x32xf32>
    %218 = vector.extract_strided_slice %214 {offsets = [0, 96], sizes = [8, 32], strides = [1, 1]} : vector<8x128xf32> to vector<8x32xf32>
    %219 = arith.mulf %216, %194 : vector<8x32xf32>
    %220 = arith.mulf %215, %218 : vector<8x32xf32>
    %221 = arith.addf %219, %220 : vector<8x32xf32>
    %222 = math.tanh %221 : vector<8x32xf32>
    %223 = arith.mulf %217, %222 : vector<8x32xf32>
    %224 = arith.index_cast %c7_i32 : i32 to index
    %c0_56 = arith.constant 0 : index
    %c0_57 = arith.constant 0 : index
    %225 = vector.load %arg7[%224, %c0_56, %c0_57] : memref<8x8x32xf32, #tpu.memory_space<vmem>>, vector<1x8x32xf32>
    %226 = vector.shape_cast %225 : vector<1x8x32xf32> to vector<8x32xf32>
    %227 = vector.shape_cast %223 : vector<8x32xf32> to vector<1x8x32xf32>
    tpu.vector_store %arg7[%224, %c0_56, %c0_57], %227 {strides = array<i32>} : memref<8x8x32xf32, #tpu.memory_space<vmem>>, vector<1x8x32xf32>,
    %c8_i32 = arith.constant 8 : i32
    %c0_58 = arith.constant 0 : index
    %c0_59 = arith.constant 0 : index
    %228 = vector.load %arg8[%c0_58, %c0_59] : memref<8x32xf32, #tpu.memory_space<vmem>>, vector<8x32xf32>
    tpu.vector_store %arg8[%c0_58, %c0_59], %223 {strides = array<i32>} : memref<8x32xf32, #tpu.memory_space<vmem>>, vector<8x32xf32>,
    %c0_60 = arith.constant 0 : index
    %c0_61 = arith.constant 0 : index
    %229 = vector.load %arg9[%c0_60, %c0_61] : memref<8x32xf32, #tpu.memory_space<vmem>>, vector<8x32xf32>
    tpu.vector_store %arg9[%c0_60, %c0_61], %221 {strides = array<i32>} : memref<8x32xf32, #tpu.memory_space<vmem>>, vector<8x32xf32>,
    return
  }
  func.func @transform_0(%arg0: i32) -> (i32, i32, i32) {
    %c0_i32 = arith.constant 0 : i32
    %c0_i32_0 = arith.constant 0 : i32
    %c0_i32_1 = arith.constant 0 : i32
    return %arg0, %c0_i32, %c0_i32_0 : i32, i32, i32
  }
  func.func @transform_1(%arg0: i32) -> (i32, i32) {
    %c0_i32 = arith.constant 0 : i32
    %c0_i32_0 = arith.constant 0 : i32
    %c0_i32_1 = arith.constant 0 : i32
    return %c0_i32, %c0_i32_0 : i32, i32
  }
  func.func @transform_2(%arg0: i32) -> (i32, i32) {
    %c0_i32 = arith.constant 0 : i32
    %c0_i32_0 = arith.constant 0 : i32
    %c0_i32_1 = arith.constant 0 : i32
    return %c0_i32, %c0_i32_0 : i32, i32
  }
  func.func @transform_3(%arg0: i32) -> (i32, i32) {
    %c0_i32 = arith.constant 0 : i32
    %c0_i32_0 = arith.constant 0 : i32
    %c0_i32_1 = arith.constant 0 : i32
    return %c0_i32, %c0_i32_0 : i32, i32
  }
  func.func @transform_4(%arg0: i32) -> (i32, i32) {
    %c0_i32 = arith.constant 0 : i32
    %c0_i32_0 = arith.constant 0 : i32
    %c0_i32_1 = arith.constant 0 : i32
    return %c0_i32, %c0_i32_0 : i32, i32
  }
  func.func @transform_5(%arg0: i32) -> (i32, i32) {
    %c0_i32 = arith.constant 0 : i32
    %c0_i32_0 = arith.constant 0 : i32
    %c0_i32_1 = arith.constant 0 : i32
    return %c0_i32, %c0_i32_0 : i32, i32
  }
  func.func @transform_6(%arg0: i32) -> (i32, i32, i32) {
    %c0_i32 = arith.constant 0 : i32
    %c0_i32_0 = arith.constant 0 : i32
    %c0_i32_1 = arith.constant 0 : i32
    return %arg0, %c0_i32, %c0_i32_0 : i32, i32, i32
  }
  func.func @transform_7(%arg0: i32) -> (i32, i32) {
    %c0_i32 = arith.constant 0 : i32
    %c0_i32_0 = arith.constant 0 : i32
    %c0_i32_1 = arith.constant 0 : i32
    return %c0_i32, %c0_i32_0 : i32, i32
  }
  func.func @transform_8(%arg0: i32) -> (i32, i32) {
    %c0_i32 = arith.constant 0 : i32
    %c0_i32_0 = arith.constant 0 : i32
    %c0_i32_1 = arith.constant 0 : i32
    return %c0_i32, %c0_i32_0 : i32, i32
  }
}

</mosaic_0001>

<bundles_post_ra>
// kernel: tpu_custom_call.1
= control target key start
LH: loop header
LB: loop body
LE: loop exit
PB: predicated region body
PF: predicated region fallthrough
CT: control target
= control target key end

     0   :  { %14 = vsyncpa [#allocation3], 0  ;;  %vm33_vm0 = vcmask 261120   ;;  %v2201_v8 = vmov 0   ;;  %s2659_s0 = inlined_call_operand.vmem [shape: f32[8,8,1], index: 0, kind: input, shape index: {}]   ;;  %s2660_s1 = inlined_call_operand.vmem [shape: f32[1,128], index: 1, kind: input, shape index: {}]   ;;  %s2661_s2 = inlined_call_operand.vmem [shape: f32[1,128], index: 2, kind: input, shape index: {}]   ;;  %s2662_s3 = inlined_call_operand.vmem [shape: f32[32,128], index: 3, kind: input, shape index: {}]   ;;  %s2663_s4 = inlined_call_operand.vmem [shape: f32[8,32], index: 4, kind: input, shape index: {}]   ;;  %s2664_s5 = inlined_call_operand.vmem [shape: f32[8,32], index: 5, kind: input, shape index: {}]   ;;  %s2665_s6 = inlined_call_operand.hbm [shape: f32[8,8,32], index: 6, kind: output, shape index: {0}]   ;;  %s2666_s7 = inlined_call_operand.hbm [shape: f32[8,32], index: 7, kind: output, shape index: {1}]   ;;  %s2667_s8 = inlined_call_operand.hbm [shape: f32[8,32], index: 8, kind: output, shape index: {2}]  }
   0x1   :  { %v40_v0 = vld [vmem:[%s2662_s3 + $0x18] sm:$0xff]  ;;  %v39_v1 = vld [vmem:[%s2662_s3 + $0x10] sm:$0xff]  ;;  %v38_v2 = vld [vmem:[%s2662_s3 + $0x8] sm:$0xff]  ;;  %2054 = vset.pattern.permute.xlu0 %v2201_v8  ;;  %2055 = vset.pattern.permute.xlu2 %v2201_v8 }
   0x2   :  { %v2264_v3 = vand.u32 4294901760, %v40_v0  ;;  %v2266_v4 = vand.u32 4294901760, %v39_v1  ;;  %v2268_v5 = vand.u32 4294901760, %v38_v2  ;;  %v37_v6 = vld [vmem:[%s2662_s3] sm:$0xff]  ;;  %2056 = vset.pattern.permute.xlu1 %v2201_v8 }
   0x3   :  { %v32_v7 = vld [vmem:[%s2663_s4] sm:$0xff]  ;;  %v2279_v10 = vand.u32 4294901760, %v37_v6 }
   0x4   :  { %v51_v9 = vld [vmem:[%s2659_s0] sm:$0xff]  ;;  %34 = vst.msk [vmem:[#allocation4] sm:$0xff] %vm33_vm0, %v32_v7  ;;  %v2286_v12 = vsub.f32 %v40_v0, %v2264_v3  ;;  %v2289_v13 = vsub.f32 %v39_v1, %v2266_v4  ;;  %176 = vmatpush.msra.mxu3 %v2264_v3  ;;  %76 = vmatpush.msra.mxu0 %v2264_v3 }
   0x5   :  { %54 = vperm.xlu0 %2054, %v51_v9   ;;  %v35_v11 = vld [vmem:[%s2664_s5] sm:$0xff]  ;;  %v2294_v14 = vsub.f32 %v38_v2, %v2268_v5 }
   0x6   :  { %36 = vst.msk [vmem:[#allocation6] sm:$0xff] %vm33_vm0, %v35_v11 }
   0x7   :  { %15 = vsyncpa [#allocation5], 0  ;;  %v2298_v15 = vsub.f32 %v37_v6, %v2279_v10  ;;  %147 = vmatpush.msra.mxu2 %v2286_v12  ;;  %v2302_v16 = vand.u32 4294901760, %v2286_v12  ;;  %178 = vmatpush.msra.mxu3 %v2266_v4  ;;  %v2306_v17 = vand.u32 4294901760, %v2289_v13  ;;  %v2309_v18 = vand.u32 4294901760, %v2294_v14  ;;  %s2202_s3 = smov 32  }
   0x8   :  { %78 = vmatpush.msra.mxu0 %v2266_v4  ;;  %v2387_v40 = vld [vmem:[%s2660_s1] ss:$0 sm:$0xff]  ;;  %v2031_v54 = vld [vmem:[%s2659_s0 + $0x8] sm:$0xff]  ;;  %s2203_s23 = smov 64   ;;  %s2205_s16 = smov [#allocation2]  }
   0x9   :  { %v2313_v19 = vand.u32 4294901760, %v2298_v15  ;;  %150 = vmatpush.msra.mxu2 %v2289_v13  ;;  %v107_v20 = vsub.f32 %v2286_v12, %v2302_v16  ;;  %v113_v21 = vsub.f32 %v2289_v13, %v2306_v17  ;;  %180 = vmatpush.msra.mxu3 %v2268_v5  ;;  %v119_v22 = vsub.f32 %v2294_v14, %v2309_v18  ;;  %v2392_v44 = vld [vmem:[%s2661_s2] ss:$0 sm:$0xff]  ;;  %s1985_s17 = sshll.u32 %s2205_s16, 4  ;;  %s1987_s5 = sshll.u32 %s2665_s6, 4  ;;  %s1986_s17 = int_to_ptr.vmem [resolvable:$true] %s1985_s17  ;;  %s1988_s5 = int_to_ptr.hbm [resolvable:$true] %s1987_s5 }
   0xa   :  { %80 = vmatpush.msra.mxu0 %v2268_v5  ;;  %s2206_s19 = smov [#allocation4]   ;;  %s2001_s24 = sshll.u32 %s2666_s7, 4  ;;  %s2002_s24 = int_to_ptr.hbm [resolvable:$true] %s2001_s24 }
   0xb   :  { %v2324_v23 = vand.u32 4294901760, %v107_v20  ;;  %153 = vmatpush.msra.mxu2 %v2294_v14  ;;  %v2327_v24 = vand.u32 4294901760, %v113_v21  ;;  %v49_v25 = vld [vmem:[#allocation4] sm:$0xff]  ;;  %182 = vmatpush.msra.mxu3 %v2279_v10  ;;  %v125_v26 = vsub.f32 %v2298_v15, %v2313_v19  ;;  %v2336_v30 = vand.u32 4294901760, %v119_v22  ;;  %s1999_s20 = sshll.u32 %s2206_s19, 4  ;;  %s2208_s6 = smov 128   ;;  %s2000_s20 = int_to_ptr.vmem [resolvable:$true] %s1999_s20 }
   0xc   :  { %v61_v27 = vsel %vm33_vm0, %v49_v25, 0  ;;  %82 = vmatpush.msra.mxu0 %v2279_v10  ;;  %s2209_s28 = smov 8  }
   0xd   :  { %v50_v28 = vld [vmem:[#allocation6] sm:$0xff]  ;;  %109 = vmatpush.msra.mxu1 %v2324_v23  ;;  %156 = vmatpush.msra.mxu2 %v2298_v15  ;;  %v83_v29 = vand.u32 4294901760, %v61_v27  ;;  %v2341_v32 = vand.u32 4294901760, %v125_v26 }
   0xe   :  { %205 = vmatpush.msrb.mxu0 %v2302_v16  ;;  %270 = vrot.lane.b32.xlu1 %v50_v28, %s2202_s3 }
   0xf   :  { %115 = vmatpush.msra.mxu1 %v2327_v24  ;;  %v84_v31 = vsub.f32 %v61_v27, %v83_v29  ;;  %352 = vmatpush.msrb.mxu3 %v2324_v23 }
  0x10   :  { %209 = vmatpush.msrb.mxu0 %v2306_v17  ;;  %319 = vmatpush.msrb.mxu2 %v2264_v3 }
  0x11   :  { %159 = vmatmul.f32.vlgmr.msra.gmra.mxu2 %v84_v31  ;;  %121 = vmatpush.msra.mxu1 %v2336_v30  ;;  %v85_v33 = vand.u32 4294901760, %v84_v31 }
  0x12   :  { %213 = vmatpush.msrb.mxu0 %v2309_v18  ;;  %358 = vmatpush.msrb.mxu3 %v2327_v24 }
  0x13   :  { %186 = vmatmul.f32.vlgmr.msra.gmra.mxu3 %v85_v33  ;;  %127 = vmatpush.msra.mxu1 %v2341_v32  ;;  %v86_v34 = vsub.f32 %v84_v31, %v85_v33 }
  0x14   :  { %129 = vmatmul.f32.vlgmr.msra.gmra.mxu1 %v83_v29  ;;  %217 = vmatpush.msrb.mxu0 %v2313_v19 }
  0x15   :  { %v87_v35 = vand.u32 4294901760, %v86_v34  ;;  %236 = vmatpush.msrb.mxu1 %v2264_v3  ;;  %364 = vmatpush.msrb.mxu3 %v2336_v30 }
  0x16   :  { %321 = vmatpush.msrb.mxu2 %v2266_v4 }
  0x17   :  { %88 = vmatmul.f32.vlgmr.msra.gmra.mxu0 %v87_v35  ;;  %238 = vmatpush.msrb.mxu1 %v2266_v4 }
  0x18   :  { %390 = vmatpush.msra.mxu0 %v2286_v12  ;;  %370 = vmatpush.msrb.mxu3 %v2341_v32 }
  0x19   :  { %240 = vmatpush.msrb.mxu1 %v2268_v5  ;;  %323 = vmatpush.msrb.mxu2 %v2268_v5 }
  0x1a   :  { %479 = vmatpush.msra.mxu3 %v2264_v3  ;;  %393 = vmatpush.msra.mxu0 %v2289_v13 }
  0x1b   :  { %242 = vmatpush.msrb.mxu1 %v2279_v10  ;;  %325 = vmatpush.msrb.mxu2 %v2279_v10 }
  0x1c   :  { %481 = vmatpush.msra.mxu3 %v2266_v4  ;;  %244 = vmatmul.f32.vlgmr.msrb.gmra.mxu1 %v83_v29 }
  0x1d   :  { %396 = vmatpush.msra.mxu0 %v2294_v14  ;;  %419 = vmatpush.msra.mxu1 %v2264_v3 }
  0x1e   :  { %483 = vmatpush.msra.mxu3 %v2268_v5  ;;  %448 = vmatpush.msra.mxu2 %v2302_v16 }
  0x1f   :  { %399 = vmatpush.msra.mxu0 %v2298_v15  ;;  %421 = vmatpush.msra.mxu1 %v2266_v4 }
  0x20   :  { %219 = vmatmul.f32.vlgmr.msrb.gmra.mxu0 %v83_v29  ;;  %485 = vmatpush.msra.mxu3 %v2279_v10 }
  0x21   :  { %423 = vmatpush.msra.mxu1 %v2268_v5  ;;  %559 = vmatpush.msrb.mxu0 %v2264_v3 }
  0x22   :  { %452 = vmatpush.msra.mxu2 %v2306_v17 }
  0x23   :  { %425 = vmatpush.msra.mxu1 %v2279_v10  ;;  %561 = vmatpush.msrb.mxu0 %v2266_v4 }
  0x24   :  { %456 = vmatpush.msra.mxu2 %v2309_v18 }
  0x25   :  { %592 = vmatpush.msrb.mxu1 %v2324_v23  ;;  %563 = vmatpush.msrb.mxu0 %v2268_v5 }
  0x26   :  { %460 = vmatpush.msra.mxu2 %v2313_v19 }
  0x27   :  { %598 = vmatpush.msrb.mxu1 %v2327_v24  ;;  %565 = vmatpush.msrb.mxu0 %v2279_v10 }
  0x29   :  { %604 = vmatpush.msrb.mxu1 %v2336_v30 }
  0x2b   :  { %610 = vmatpush.msrb.mxu1 %v2341_v32 }
  0x77   :  { %v55_v41 = vpop.permute.xlu0 %54 }
  0x78   :  { %v57_v45 = vmul.f32 %v2387_v40, %v55_v41 }
  0x7a   :  { %v58_v49 = vadd.f32 %v2392_v44, %v57_v45 }
  0x80   :  { %v271_v9 = vpop.permute.xlu1 %270 }
  0x91   :  { %v130_v36 = vpop.f32.mrf.mxu1 }
  0x94   :  { %v89_v37 = vpop.f32.mrf.mxu0  ;;  %v160_v38 = vpop.f32.mrf.mxu2 }
  0x95   :  { %v131_v39 = vadd.f32 %v130_v36, %v89_v37 }
  0x96   :  { %v187_v43 = vpop.f32.mrf.mxu3 }
  0x97   :  { %v161_v42 = vadd.f32 %v160_v38, %v131_v39 }
  0x99   :  { %v188_v46 = vadd.f32 %v187_v43, %v161_v42  ;;  %v245_v48 = vpop.f32.mrf.mxu1 }
  0x9d   :  { %v220_v47 = vpop.f32.mrf.mxu0 }
  0x9e   :  { %v221_v50 = vadd.f32 %v220_v47, %v188_v46 }
  0xa0   :  { %v246_v51 = vadd.f32 %v245_v48, %v221_v50 }
  0xa2   :  { %v248_v52 = vadd.f32 %v246_v51, %v58_v49 }
  0xa4   :  { %2059 = vtanh.f32 %v248_v52  ;;  %v2030_v55 = vmul.f32 -1.442695, %v248_v52 }
  0xa6   :  { %2061 = vpow2.f32 %v2030_v55 }
  0xaa   :  { %v2060_v53 = vpop.eup %2059 }
  0xab   :  { %275 = vrot.lane.b32.xlu0 %v2060_v53, %s2202_s3 }
  0xac   :  { %v2062_v56 = vpop.eup %2061 }
  0xad   :  { %v252_v57 = vadd.f32 1.0, %v2062_v56 }
  0xaf   :  { %2063 = vrcp.f32 %v252_v57  ;;  %v264_v63 = vand.u32 2147483648, %v252_v57  ;;  %vm258_vm2 = vweird.f32 %v252_v57  ;;  %v262_v0 = vand.u32 2147483647, %v252_v57 }
  0xb1   :  { %v265_v2 = vor.u32 1.1754944e-38, %v264_v63  ;;  %vm263_vm4 = vcmp.eq.f32.partialorder %v262_v0, 8.507059e+37 }
  0xb3   :  { %299 = vperm.xlu0 %2054, %v2031_v54  }
  0xb5   :  { %v2064_v58 = vpop.eup %2063 }
  0xb6   :  { %v254_v59 = vmul.f32 %v2064_v58, %v252_v57  ;;  %vm259_vm1 = vweird.f32 %v2064_v58 }
  0xb7   :  { %vm260_vm3 = vmor %vm258_vm2, %vm259_vm1 }
  0xb8   :  { %v255_v60 = vsub.f32 1.0, %v254_v59 }
  0xba   :  { %v256_v61 = vmul.f32 %v2064_v58, %v255_v60 }
  0xbc   :  { %v257_v62 = vadd.f32 %v2064_v58, %v256_v61 }
  0xbe   :  { %v261_v1 = vsel %vm260_vm3, %v2064_v58, %v257_v62 }
  0xbf   :  { %v266_v6 = vsel %vm263_vm4, %v265_v2, %v261_v1 }
  0xc0   :  { %v273_v11 = vmul.f32 %v271_v9, %v266_v6 }
 0x11d   :  { %v276_v7 = vpop.permute.xlu0 %275 }
 0x11e   :  { %v278_v8 = vmul.f32 %v276_v7, %v266_v6 }
 0x120   :  { %280 = vrot.lane.b32.xlu1 %v278_v8, %s2202_s3 }
 0x125   :  { %v300_v42 = vpop.permute.xlu0 %299 }
 0x126   :  { %v302_v45 = vmul.f32 %v2387_v40, %v300_v42 }
 0x128   :  { %v303_v50 = vadd.f32 %v2392_v44, %v302_v45 }
 0x192   :  { %v281_v20 = vpop.permute.xlu1 %280 }
 0x193   :  { %v2401_v21 = vadd.f32 %v281_v20, %v273_v11 }
 0x195   :  { %2065 = vtanh.f32 %v2401_v21 }
 0x19b   :  { %v2066_v22 = vpop.eup %2065 }
 0x19c   :  { %286 = vrot.lane.b32.xlu2 %v2066_v22, %s2202_s3 }
 0x1f6   :  { %v287_v25 = vpop.permute.xlu2 %286 }
 0x1f7   :  { %v289_v26 = vmul.f32 %v287_v25, %v266_v6 }
 0x1f9   :  { %291 = vrot.lane.b32.xlu2 %v289_v26, %s2203_s23  ;;  %v2033_v26 = vld [vmem:[%s2659_s0 + $0x10] sm:$0xff] }
 0x253   :  { %v292_v27 = vpop.permute.xlu2 %291 }
 0x254   :  { %294 = vst.msk [vmem:[#allocation2] sm:$0xff] %vm33_vm0, %v292_v27  ;;  %v304_v28 = vsel %vm33_vm0, %v292_v27, 0 }
 0x255   :  { %v326_v29 = vand.u32 4294901760, %v304_v28 }
 0x257   :  { %v327_v31 = vsub.f32 %v304_v28, %v326_v29  ;;  %372 = vmatmul.f32.vlgmr.msrb.gmra.mxu3 %v326_v29 }
 0x258   :  { %659 = vmatpush.msrb.mxu3 %v2264_v3 }
 0x259   :  { %v328_v33 = vand.u32 4294901760, %v327_v31  ;;  %402 = vmatmul.f32.vlgmr.msra.gmra.mxu0 %v327_v31 }
 0x25a   :  { %661 = vmatpush.msrb.mxu3 %v2266_v4  ;;  %688 = vmatpush.msra.mxu0 %v2302_v16 }
 0x25b   :  { %429 = vmatmul.f32.vlgmr.msra.gmra.mxu1 %v328_v33  ;;  %v329_v34 = vsub.f32 %v327_v31, %v328_v33 }
 0x25c   :  { %663 = vmatpush.msrb.mxu3 %v2268_v5  ;;  %719 = vmatpush.msra.mxu1 %v2264_v3 }
 0x25d   :  { %v330_v35 = vand.u32 4294901760, %v329_v34  ;;  %692 = vmatpush.msra.mxu0 %v2306_v17 }
 0x25e   :  { %665 = vmatpush.msrb.mxu3 %v2279_v10  ;;  %721 = vmatpush.msra.mxu1 %v2266_v4 }
 0x25f   :  { %331 = vmatmul.f32.vlgmr.msrb.gmra.mxu2 %v330_v35  ;;  %487 = vmatmul.f32.vlgmr.msra.gmra.mxu3 %v326_v29 }
 0x260   :  { %630 = vmatpush.msrb.mxu2 %v2286_v12  ;;  %723 = vmatpush.msra.mxu1 %v2268_v5 }
 0x261   :  { %696 = vmatpush.msra.mxu0 %v2309_v18  ;;  %832 = vmatpush.msra.mxu3 %v2324_v23 }
 0x262   :  { %633 = vmatpush.msrb.mxu2 %v2289_v13  ;;  %725 = vmatpush.msra.mxu1 %v2279_v10 }
 0x263   :  { %700 = vmatpush.msra.mxu0 %v2313_v19  ;;  %838 = vmatpush.msra.mxu3 %v2327_v24 }
 0x264   :  { %636 = vmatpush.msrb.mxu2 %v2294_v14 }
 0x265   :  { %844 = vmatpush.msra.mxu3 %v2336_v30 }
 0x266   :  { %639 = vmatpush.msrb.mxu2 %v2298_v15 }
 0x267   :  { %462 = vmatmul.f32.vlgmr.msra.gmra.mxu2 %v326_v29  ;;  %850 = vmatpush.msra.mxu3 %v2341_v32 }
 0x268   :  { %799 = vmatpush.msra.mxu2 %v2264_v3 }
 0x26a   :  { %801 = vmatpush.msra.mxu2 %v2266_v4 }
 0x26c   :  { %803 = vmatpush.msra.mxu2 %v2268_v5 }
 0x26e   :  { %805 = vmatpush.msra.mxu2 %v2279_v10 }
 0x2d6   :  { %v403_v39 = vpop.f32.mrf.mxu0 }
 0x2d8   :  { %v430_v43 = vpop.f32.mrf.mxu1 }
 0x2da   :  { %v373_v36 = vpop.f32.mrf.mxu3 }
 0x2e2   :  { %v332_v37 = vpop.f32.mrf.mxu2  ;;  %v488_v49 = vpop.f32.mrf.mxu3 }
 0x2e3   :  { %v374_v38 = vadd.f32 %v373_v36, %v332_v37 }
 0x2e5   :  { %v404_v41 = vadd.f32 %v403_v39, %v374_v38 }
 0x2e7   :  { %v431_v46 = vadd.f32 %v430_v43, %v404_v41 }
 0x2ea   :  { %v463_v47 = vpop.f32.mrf.mxu2 }
 0x2eb   :  { %v464_v48 = vadd.f32 %v463_v47, %v431_v46 }
 0x2ed   :  { %v489_v51 = vadd.f32 %v488_v49, %v464_v48 }
 0x2ef   :  { %v491_v52 = vadd.f32 %v489_v51, %v303_v50 }
 0x2f1   :  { %2067 = vtanh.f32 %v491_v52  ;;  %v2032_v54 = vmul.f32 -1.442695, %v491_v52 }
 0x2f3   :  { %2069 = vpow2.f32 %v2032_v54 }
 0x2f7   :  { %v2068_v53 = vpop.eup %2067 }
 0x2f8   :  { %514 = vrot.lane.b32.xlu1 %v2068_v53, %s2202_s3 }
 0x2f9   :  { %v2070_v55 = vpop.eup %2069 }
 0x2fa   :  { %v495_v56 = vadd.f32 1.0, %v2070_v55 }
 0x2fc   :  { %2071 = vrcp.f32 %v495_v56  ;;  %v507_v62 = vand.u32 2147483648, %v495_v56  ;;  %vm501_vm6 = vweird.f32 %v495_v56  ;;  %v505_v63 = vand.u32 2147483647, %v495_v56 }
 0x2fe   :  { %v508_v1 = vor.u32 1.1754944e-38, %v507_v62  ;;  %vm506_vm8 = vcmp.eq.f32.partialorder %v505_v63, 8.507059e+37 }
 0x302   :  { %v2072_v57 = vpop.eup %2071 }
 0x303   :  { %v497_v58 = vmul.f32 %v2072_v57, %v495_v56  ;;  %vm502_vm5 = vweird.f32 %v2072_v57 }
 0x304   :  { %vm503_vm7 = vmor %vm501_vm6, %vm502_vm5 }
 0x305   :  { %v498_v59 = vsub.f32 1.0, %v497_v58 }
 0x307   :  { %v499_v60 = vmul.f32 %v2072_v57, %v498_v59 }
 0x309   :  { %v500_v61 = vadd.f32 %v2072_v57, %v499_v60 }
 0x30b   :  { %v504_v0 = vsel %vm503_vm7, %v2072_v57, %v500_v61 }
 0x30c   :  { %v509_v6 = vsel %vm506_vm8, %v508_v1, %v504_v0 }
 0x30d   :  { %v512_v8 = vmul.f32 %v509_v6, %v2401_v21 }
 0x36a   :  { %v515_v2 = vpop.permute.xlu1 %514 }
 0x36b   :  { %v517_v7 = vmul.f32 %v515_v2, %v509_v6 }
 0x36d   :  { %519 = vrot.lane.b32.xlu2 %v517_v7, %s2202_s3 }
 0x375   :  { %539 = vperm.xlu2 %2055, %v2033_v26   ;;  %v2035_v26 = vld [vmem:[%s2659_s0 + $0x18] sm:$0xff] }
 0x3c7   :  { %v520_v9 = vpop.permute.xlu2 %519 }
 0x3c8   :  { %v2437_v11 = vadd.f32 %v520_v9, %v512_v8 }
 0x3ca   :  { %2073 = vtanh.f32 %v2437_v11 }
 0x3cf   :  { %v540_v39 = vpop.permute.xlu2 %539 }
 0x3d0   :  { %v2074_v20 = vpop.eup %2073  ;;  %v542_v42 = vmul.f32 %v2387_v40, %v540_v39 }
 0x3d1   :  { %525 = vrot.lane.b32.xlu0 %v2074_v20, %s2202_s3 }
 0x3d2   :  { %v543_v47 = vadd.f32 %v2392_v44, %v542_v42 }
 0x443   :  { %v526_v22 = vpop.permute.xlu0 %525 }
 0x444   :  { %v528_v25 = vmul.f32 %v526_v22, %v509_v6 }
 0x446   :  { %530 = vrot.lane.b32.xlu1 %v528_v25, %s2203_s23 }
 0x4b8   :  { %v531_v27 = vpop.permute.xlu1 %530 }
 0x4b9   :  { %534 = vst.msk [vmem:[#allocation2 + $0x8] sm:$0xff] %vm33_vm0, %v531_v27  ;;  %v544_v21 = vsel %vm33_vm0, %v531_v27, 0 }
 0x4ba   :  { %v566_v28 = vand.u32 4294901760, %v544_v21 }
 0x4bc   :  { %v567_v29 = vsub.f32 %v544_v21, %v566_v28  ;;  %612 = vmatmul.f32.vlgmr.msrb.gmra.mxu1 %v566_v28 }
 0x4bd   :  { %899 = vmatpush.msrb.mxu1 %v2264_v3 }
 0x4be   :  { %v568_v31 = vand.u32 4294901760, %v567_v29  ;;  %642 = vmatmul.f32.vlgmr.msrb.gmra.mxu2 %v567_v29 }
 0x4bf   :  { %901 = vmatpush.msrb.mxu1 %v2266_v4  ;;  %928 = vmatpush.msrb.mxu2 %v2302_v16 }
 0x4c0   :  { %v569_v33 = vsub.f32 %v567_v29, %v568_v31  ;;  %669 = vmatmul.f32.vlgmr.msrb.gmra.mxu3 %v568_v31 }
 0x4c1   :  { %903 = vmatpush.msrb.mxu1 %v2268_v5  ;;  %959 = vmatpush.msrb.mxu3 %v2264_v3 }
 0x4c2   :  { %v570_v34 = vand.u32 4294901760, %v569_v33  ;;  %932 = vmatpush.msrb.mxu2 %v2306_v17 }
 0x4c3   :  { %905 = vmatpush.msrb.mxu1 %v2279_v10  ;;  %961 = vmatpush.msrb.mxu3 %v2266_v4 }
 0x4c4   :  { %571 = vmatmul.f32.vlgmr.msrb.gmra.mxu0 %v570_v34  ;;  %727 = vmatmul.f32.vlgmr.msra.gmra.mxu1 %v566_v28 }
 0x4c5   :  { %870 = vmatpush.msrb.mxu0 %v2286_v12  ;;  %963 = vmatpush.msrb.mxu3 %v2268_v5 }
 0x4c6   :  { %936 = vmatpush.msrb.mxu2 %v2309_v18  ;;  %1072 = vmatpush.msra.mxu1 %v2324_v23 }
 0x4c7   :  { %873 = vmatpush.msrb.mxu0 %v2289_v13  ;;  %965 = vmatpush.msrb.mxu3 %v2279_v10 }
 0x4c8   :  { %940 = vmatpush.msrb.mxu2 %v2313_v19  ;;  %1078 = vmatpush.msra.mxu1 %v2327_v24 }
 0x4c9   :  { %876 = vmatpush.msrb.mxu0 %v2294_v14 }
 0x4ca   :  { %1084 = vmatpush.msra.mxu1 %v2336_v30 }
 0x4cb   :  { %879 = vmatpush.msrb.mxu0 %v2298_v15 }
 0x4cc   :  { %702 = vmatmul.f32.vlgmr.msra.gmra.mxu0 %v566_v28  ;;  %1090 = vmatpush.msra.mxu1 %v2341_v32 }
 0x4cd   :  { %1039 = vmatpush.msra.mxu0 %v2264_v3 }
 0x4cf   :  { %1041 = vmatpush.msra.mxu0 %v2266_v4 }
 0x4d1   :  { %1043 = vmatpush.msra.mxu0 %v2268_v5 }
 0x4d3   :  { %1045 = vmatpush.msra.mxu0 %v2279_v10 }
 0x539   :  { %v613_v35 = vpop.f32.mrf.mxu1 }
 0x541   :  { %v572_v36 = vpop.f32.mrf.mxu0  ;;  %v643_v38 = vpop.f32.mrf.mxu2 }
 0x542   :  { %v614_v37 = vadd.f32 %v613_v35, %v572_v36  ;;  %v728_v49 = vpop.f32.mrf.mxu1 }
 0x543   :  { %v670_v43 = vpop.f32.mrf.mxu3 }
 0x544   :  { %v644_v41 = vadd.f32 %v643_v38, %v614_v37 }
 0x546   :  { %v671_v45 = vadd.f32 %v670_v43, %v644_v41 }
 0x549   :  { %v703_v46 = vpop.f32.mrf.mxu0 }
 0x54a   :  { %v704_v48 = vadd.f32 %v703_v46, %v671_v45 }
 0x54c   :  { %v729_v50 = vadd.f32 %v728_v49, %v704_v48 }
 0x54e   :  { %v731_v51 = vadd.f32 %v729_v50, %v543_v47 }
 0x550   :  { %2075 = vtanh.f32 %v731_v51  ;;  %v2034_v53 = vmul.f32 -1.442695, %v731_v51 }
 0x552   :  { %2077 = vpow2.f32 %v2034_v53 }
 0x556   :  { %v2076_v52 = vpop.eup %2075 }
 0x557   :  { %754 = vrot.lane.b32.xlu0 %v2076_v52, %s2202_s3 }
 0x558   :  { %v2078_v54 = vpop.eup %2077 }
 0x559   :  { %v735_v55 = vadd.f32 1.0, %v2078_v54 }
 0x55b   :  { %2079 = vrcp.f32 %v735_v55  ;;  %v747_v61 = vand.u32 2147483648, %v735_v55  ;;  %vm741_vm10 = vweird.f32 %v735_v55  ;;  %v745_v62 = vand.u32 2147483647, %v735_v55 }
 0x55d   :  { %v748_v0 = vor.u32 1.1754944e-38, %v747_v61  ;;  %vm746_vm12 = vcmp.eq.f32.partialorder %v745_v62, 8.507059e+37 }
 0x561   :  { %v2080_v56 = vpop.eup %2079 }
 0x562   :  { %v737_v57 = vmul.f32 %v2080_v56, %v735_v55  ;;  %vm742_vm9 = vweird.f32 %v2080_v56 }
 0x563   :  { %vm743_vm11 = vmor %vm741_vm10, %vm742_vm9 }
 0x564   :  { %v738_v58 = vsub.f32 1.0, %v737_v57 }
 0x566   :  { %v739_v59 = vmul.f32 %v2080_v56, %v738_v58 }
 0x568   :  { %v740_v60 = vadd.f32 %v2080_v56, %v739_v59 }
 0x56a   :  { %v744_v63 = vsel %vm743_vm11, %v2080_v56, %v740_v60 }
 0x56b   :  { %v749_v2 = vsel %vm746_vm12, %v748_v0, %v744_v63 }
 0x56c   :  { %v752_v7 = vmul.f32 %v749_v2, %v2437_v11 }
 0x5c9   :  { %v755_v1 = vpop.permute.xlu0 %754 }
 0x5ca   :  { %v757_v6 = vmul.f32 %v755_v1, %v749_v2 }
 0x5cc   :  { %759 = vrot.lane.b32.xlu1 %v757_v6, %s2202_s3  ;;  %v2037_v6 = vld [vmem:[%s2659_s0 + $0x20] sm:$0xff] }
 0x5d4   :  { %779 = vperm.xlu1 %2056, %v2035_v26  }
 0x63e   :  { %v760_v8 = vpop.permute.xlu1 %759 }
 0x63f   :  { %v2476_v9 = vadd.f32 %v760_v8, %v752_v7 }
 0x641   :  { %2081 = vtanh.f32 %v2476_v9 }
 0x646   :  { %v780_v38 = vpop.permute.xlu1 %779 }
 0x647   :  { %v2082_v20 = vpop.eup %2081  ;;  %v782_v41 = vmul.f32 %v2387_v40, %v780_v38 }
 0x648   :  { %765 = vrot.lane.b32.xlu2 %v2082_v20, %s2202_s3 }
 0x649   :  { %v783_v46 = vadd.f32 %v2392_v44, %v782_v41 }
 0x6a2   :  { %v766_v22 = vpop.permute.xlu2 %765 }
 0x6a3   :  { %v768_v25 = vmul.f32 %v766_v22, %v749_v2 }
 0x6a5   :  { %770 = vrot.lane.b32.xlu0 %v768_v25, %s2203_s23 }
 0x717   :  { %v771_v27 = vpop.permute.xlu0 %770 }
 0x718   :  { %774 = vst.msk [vmem:[#allocation2 + $0x10] sm:$0xff] %vm33_vm0, %v771_v27  ;;  %v784_v11 = vsel %vm33_vm0, %v771_v27, 0 }
 0x719   :  { %v806_v21 = vand.u32 4294901760, %v784_v11 }
 0x71b   :  { %v807_v28 = vsub.f32 %v784_v11, %v806_v21  ;;  %852 = vmatmul.f32.vlgmr.msra.gmra.mxu3 %v806_v21 }
 0x71c   :  { %1139 = vmatpush.msra.mxu3 %v2264_v3 }
 0x71d   :  { %v808_v29 = vand.u32 4294901760, %v807_v28  ;;  %882 = vmatmul.f32.vlgmr.msrb.gmra.mxu0 %v807_v28 }
 0x71e   :  { %1141 = vmatpush.msra.mxu3 %v2266_v4  ;;  %1168 = vmatpush.msrb.mxu0 %v2302_v16 }
 0x71f   :  { %v809_v31 = vsub.f32 %v807_v28, %v808_v29  ;;  %909 = vmatmul.f32.vlgmr.msrb.gmra.mxu1 %v808_v29 }
 0x720   :  { %1143 = vmatpush.msra.mxu3 %v2268_v5  ;;  %1199 = vmatpush.msrb.mxu1 %v2264_v3 }
 0x721   :  { %v810_v33 = vand.u32 4294901760, %v809_v31  ;;  %1172 = vmatpush.msrb.mxu0 %v2306_v17 }
 0x722   :  { %1145 = vmatpush.msra.mxu3 %v2279_v10  ;;  %1201 = vmatpush.msrb.mxu1 %v2266_v4 }
 0x723   :  { %811 = vmatmul.f32.vlgmr.msra.gmra.mxu2 %v810_v33  ;;  %967 = vmatmul.f32.vlgmr.msrb.gmra.mxu3 %v806_v21 }
 0x724   :  { %1110 = vmatpush.msra.mxu2 %v2286_v12  ;;  %1203 = vmatpush.msrb.mxu1 %v2268_v5 }
 0x725   :  { %1176 = vmatpush.msrb.mxu0 %v2309_v18  ;;  %1312 = vmatpush.msrb.mxu3 %v2324_v23 }
 0x726   :  { %1113 = vmatpush.msra.mxu2 %v2289_v13  ;;  %1205 = vmatpush.msrb.mxu1 %v2279_v10 }
 0x727   :  { %1180 = vmatpush.msrb.mxu0 %v2313_v19  ;;  %1318 = vmatpush.msrb.mxu3 %v2327_v24 }
 0x728   :  { %1116 = vmatpush.msra.mxu2 %v2294_v14 }
 0x729   :  { %1324 = vmatpush.msrb.mxu3 %v2336_v30 }
 0x72a   :  { %1119 = vmatpush.msra.mxu2 %v2298_v15 }
 0x72b   :  { %942 = vmatmul.f32.vlgmr.msrb.gmra.mxu2 %v806_v21  ;;  %1330 = vmatpush.msrb.mxu3 %v2341_v32 }
 0x72c   :  { %1279 = vmatpush.msrb.mxu2 %v2264_v3 }
 0x72e   :  { %1281 = vmatpush.msrb.mxu2 %v2266_v4 }
 0x730   :  { %1283 = vmatpush.msrb.mxu2 %v2268_v5 }
 0x732   :  { %1285 = vmatpush.msrb.mxu2 %v2279_v10 }
 0x79a   :  { %v883_v37 = vpop.f32.mrf.mxu0 }
 0x79c   :  { %v910_v42 = vpop.f32.mrf.mxu1 }
 0x79e   :  { %v853_v34 = vpop.f32.mrf.mxu3 }
 0x7a6   :  { %v812_v35 = vpop.f32.mrf.mxu2  ;;  %v968_v48 = vpop.f32.mrf.mxu3 }
 0x7a7   :  { %v854_v36 = vadd.f32 %v853_v34, %v812_v35 }
 0x7a9   :  { %v884_v39 = vadd.f32 %v883_v37, %v854_v36 }
 0x7ab   :  { %v911_v43 = vadd.f32 %v910_v42, %v884_v39 }
 0x7ae   :  { %v943_v45 = vpop.f32.mrf.mxu2 }
 0x7af   :  { %v944_v47 = vadd.f32 %v943_v45, %v911_v43 }
 0x7b1   :  { %v969_v49 = vadd.f32 %v968_v48, %v944_v47 }
 0x7b3   :  { %v971_v50 = vadd.f32 %v969_v49, %v783_v46 }
 0x7b5   :  { %2083 = vtanh.f32 %v971_v50  ;;  %v2036_v52 = vmul.f32 -1.442695, %v971_v50 }
 0x7b7   :  { %2085 = vpow2.f32 %v2036_v52 }
 0x7bb   :  { %v2084_v51 = vpop.eup %2083 }
 0x7bc   :  { %994 = vrot.lane.b32.xlu2 %v2084_v51, %s2202_s3 }
 0x7bd   :  { %v2086_v53 = vpop.eup %2085 }
 0x7be   :  { %v975_v54 = vadd.f32 1.0, %v2086_v53 }
 0x7c0   :  { %2087 = vrcp.f32 %v975_v54  ;;  %v987_v60 = vand.u32 2147483648, %v975_v54  ;;  %vm981_vm14 = vweird.f32 %v975_v54  ;;  %v985_v61 = vand.u32 2147483647, %v975_v54 }
 0x7c2   :  { %v988_v63 = vor.u32 1.1754944e-38, %v987_v60  ;;  %vm986_vm1 = vcmp.eq.f32.partialorder %v985_v61, 8.507059e+37 }
 0x7c6   :  { %v2088_v55 = vpop.eup %2087 }
 0x7c7   :  { %v977_v56 = vmul.f32 %v2088_v55, %v975_v54  ;;  %vm982_vm13 = vweird.f32 %v2088_v55 }
 0x7c8   :  { %vm983_vm15 = vmor %vm981_vm14, %vm982_vm13 }
 0x7c9   :  { %v978_v57 = vsub.f32 1.0, %v977_v56 }
 0x7cb   :  { %v979_v58 = vmul.f32 %v2088_v55, %v978_v57 }
 0x7cd   :  { %v980_v59 = vadd.f32 %v2088_v55, %v979_v58 }
 0x7cf   :  { %v984_v62 = vsel %vm983_vm15, %v2088_v55, %v980_v59 }
 0x7d0   :  { %v989_v1 = vsel %vm986_vm1, %v988_v63, %v984_v62 }
 0x7d1   :  { %v992_v7 = vmul.f32 %v989_v1, %v2476_v9 }
 0x816   :  { %v995_v0 = vpop.permute.xlu2 %994 }
 0x817   :  { %v997_v2 = vmul.f32 %v995_v0, %v989_v1 }
 0x819   :  { %999 = vrot.lane.b32.xlu0 %v997_v2, %s2202_s3  ;;  %v2039_v2 = vld [vmem:[%s2659_s0 + $0x28] sm:$0xff] }
 0x821   :  { %1019 = vperm.xlu0 %2054, %v2037_v6  }
 0x88b   :  { %v1000_v8 = vpop.permute.xlu0 %999 }
 0x88c   :  { %v2518_v20 = vadd.f32 %v1000_v8, %v992_v7 }
 0x88e   :  { %2089 = vtanh.f32 %v2518_v20 }
 0x893   :  { %v1020_v38 = vpop.permute.xlu0 %1019 }
 0x894   :  { %v2090_v22 = vpop.eup %2089  ;;  %v1022_v41 = vmul.f32 %v2387_v40, %v1020_v38 }
 0x895   :  { %1005 = vrot.lane.b32.xlu1 %v2090_v22, %s2202_s3 }
 0x896   :  { %v1023_v47 = vadd.f32 %v2392_v44, %v1022_v41 }
 0x907   :  { %v1006_v25 = vpop.permute.xlu1 %1005 }
 0x908   :  { %v1008_v26 = vmul.f32 %v1006_v25, %v989_v1 }
 0x90a   :  { %1010 = vrot.lane.b32.xlu2 %v1008_v26, %s2203_s23 }
 0x964   :  { %v1011_v27 = vpop.permute.xlu2 %1010 }
 0x965   :  { %1014 = vst.msk [vmem:[#allocation2 + $0x18] sm:$0xff] %vm33_vm0, %v1011_v27  ;;  %v1024_v11 = vsel %vm33_vm0, %v1011_v27, 0 }
 0x966   :  { %v1046_v21 = vand.u32 4294901760, %v1024_v11 }
 0x968   :  { %v1047_v28 = vsub.f32 %v1024_v11, %v1046_v21  ;;  %1092 = vmatmul.f32.vlgmr.msra.gmra.mxu1 %v1046_v21 }
 0x969   :  { %1379 = vmatpush.msra.mxu1 %v2264_v3 }
 0x96a   :  { %v1048_v9 = vand.u32 4294901760, %v1047_v28  ;;  %1122 = vmatmul.f32.vlgmr.msra.gmra.mxu2 %v1047_v28 }
 0x96b   :  { %1381 = vmatpush.msra.mxu1 %v2266_v4  ;;  %1408 = vmatpush.msra.mxu2 %v2302_v16 }
 0x96c   :  { %v1049_v29 = vsub.f32 %v1047_v28, %v1048_v9  ;;  %1149 = vmatmul.f32.vlgmr.msra.gmra.mxu3 %v1048_v9 }
 0x96d   :  { %1383 = vmatpush.msra.mxu1 %v2268_v5  ;;  %1439 = vmatpush.msra.mxu3 %v2264_v3 }
 0x96e   :  { %v1050_v31 = vand.u32 4294901760, %v1049_v29  ;;  %1412 = vmatpush.msra.mxu2 %v2306_v17 }
 0x96f   :  { %1385 = vmatpush.msra.mxu1 %v2279_v10  ;;  %1441 = vmatpush.msra.mxu3 %v2266_v4 }
 0x970   :  { %1051 = vmatmul.f32.vlgmr.msra.gmra.mxu0 %v1050_v31  ;;  %1207 = vmatmul.f32.vlgmr.msrb.gmra.mxu1 %v1046_v21 }
 0x971   :  { %1350 = vmatpush.msra.mxu0 %v2286_v12  ;;  %1443 = vmatpush.msra.mxu3 %v2268_v5 }
 0x972   :  { %1416 = vmatpush.msra.mxu2 %v2309_v18  ;;  %1552 = vmatpush.msrb.mxu1 %v2324_v23 }
 0x973   :  { %1353 = vmatpush.msra.mxu0 %v2289_v13  ;;  %1445 = vmatpush.msra.mxu3 %v2279_v10 }
 0x974   :  { %1420 = vmatpush.msra.mxu2 %v2313_v19  ;;  %1558 = vmatpush.msrb.mxu1 %v2327_v24 }
 0x975   :  { %1356 = vmatpush.msra.mxu0 %v2294_v14 }
 0x976   :  { %1564 = vmatpush.msrb.mxu1 %v2336_v30 }
 0x977   :  { %1359 = vmatpush.msra.mxu0 %v2298_v15 }
 0x978   :  { %1182 = vmatmul.f32.vlgmr.msrb.gmra.mxu0 %v1046_v21  ;;  %1570 = vmatpush.msrb.mxu1 %v2341_v32 }
 0x979   :  { %1519 = vmatpush.msrb.mxu0 %v2264_v3 }
 0x97b   :  { %1521 = vmatpush.msrb.mxu0 %v2266_v4 }
 0x97d   :  { %1523 = vmatpush.msrb.mxu0 %v2268_v5 }
 0x97f   :  { %1525 = vmatpush.msrb.mxu0 %v2279_v10 }
 0x9e5   :  { %v1093_v33 = vpop.f32.mrf.mxu1 }
 0x9ed   :  { %v1052_v34 = vpop.f32.mrf.mxu0  ;;  %v1123_v36 = vpop.f32.mrf.mxu2 }
 0x9ee   :  { %v1094_v35 = vadd.f32 %v1093_v33, %v1052_v34  ;;  %v1208_v46 = vpop.f32.mrf.mxu1 }
 0x9ef   :  { %v1150_v39 = vpop.f32.mrf.mxu3 }
 0x9f0   :  { %v1124_v37 = vadd.f32 %v1123_v36, %v1094_v35 }
 0x9f2   :  { %v1151_v42 = vadd.f32 %v1150_v39, %v1124_v37 }
 0x9f5   :  { %v1183_v43 = vpop.f32.mrf.mxu0 }
 0x9f6   :  { %v1184_v45 = vadd.f32 %v1183_v43, %v1151_v42 }
 0x9f8   :  { %v1209_v48 = vadd.f32 %v1208_v46, %v1184_v45 }
 0x9fa   :  { %v1211_v49 = vadd.f32 %v1209_v48, %v1023_v47 }
 0x9fc   :  { %2091 = vtanh.f32 %v1211_v49  ;;  %v2038_v51 = vmul.f32 -1.442695, %v1211_v49 }
 0x9fe   :  { %2093 = vpow2.f32 %v2038_v51 }
 0xa02   :  { %v2092_v50 = vpop.eup %2091 }
 0xa03   :  { %1234 = vrot.lane.b32.xlu1 %v2092_v50, %s2202_s3 }
 0xa04   :  { %v2094_v52 = vpop.eup %2093 }
 0xa05   :  { %v1215_v53 = vadd.f32 1.0, %v2094_v52 }
 0xa07   :  { %2095 = vrcp.f32 %v1215_v53  ;;  %v1227_v59 = vand.u32 2147483648, %v1215_v53  ;;  %vm1221_vm3 = vweird.f32 %v1215_v53  ;;  %v1225_v60 = vand.u32 2147483647, %v1215_v53 }
 0xa09   :  { %v1228_v62 = vor.u32 1.1754944e-38, %v1227_v59  ;;  %vm1226_vm5 = vcmp.eq.f32.partialorder %v1225_v60, 8.507059e+37  ;;  %v2041_v59 = vld [vmem:[%s2659_s0 + $0x30] sm:$0xff] }
 0xa0d   :  { %v2096_v54 = vpop.eup %2095 }
 0xa0e   :  { %v1217_v55 = vmul.f32 %v2096_v54, %v1215_v53  ;;  %vm1222_vm2 = vweird.f32 %v2096_v54 }
 0xa0f   :  { %vm1223_vm4 = vmor %vm1221_vm3, %vm1222_vm2 }
 0xa10   :  { %v1218_v56 = vsub.f32 1.0, %v1217_v55 }
 0xa12   :  { %v1219_v57 = vmul.f32 %v2096_v54, %v1218_v56 }
 0xa14   :  { %v1220_v58 = vadd.f32 %v2096_v54, %v1219_v57 }
 0xa16   :  { %v1224_v61 = vsel %vm1223_vm4, %v2096_v54, %v1220_v58 }
 0xa17   :  { %v1229_v0 = vsel %vm1226_vm5, %v1228_v62, %v1224_v61 }
 0xa18   :  { %v1232_v6 = vmul.f32 %v1229_v0, %v2518_v20 }
 0xa75   :  { %v1235_v63 = vpop.permute.xlu1 %1234 }
 0xa76   :  { %v1237_v1 = vmul.f32 %v1235_v63, %v1229_v0 }
 0xa78   :  { %1239 = vrot.lane.b32.xlu2 %v1237_v1, %s2202_s3 }
 0xa80   :  { %1259 = vperm.xlu2 %2055, %v2039_v2  }
 0xad2   :  { %v1240_v7 = vpop.permute.xlu2 %1239 }
 0xad3   :  { %v2557_v8 = vadd.f32 %v1240_v7, %v1232_v6 }
 0xad5   :  { %2097 = vtanh.f32 %v2557_v8 }
 0xada   :  { %v1260_v35 = vpop.permute.xlu2 %1259 }
 0xadb   :  { %v2098_v22 = vpop.eup %2097  ;;  %v1262_v36 = vmul.f32 %v2387_v40, %v1260_v35 }
 0xadc   :  { %1245 = vrot.lane.b32.xlu0 %v2098_v22, %s2202_s3 }
 0xadd   :  { %v1263_v41 = vadd.f32 %v2392_v44, %v1262_v36 }
 0xb4e   :  { %v1246_v25 = vpop.permute.xlu0 %1245 }
 0xb4f   :  { %v1248_v26 = vmul.f32 %v1246_v25, %v1229_v0 }
 0xb51   :  { %1250 = vrot.lane.b32.xlu1 %v1248_v26, %s2203_s23 }
 0xbc3   :  { %v1251_v27 = vpop.permute.xlu1 %1250 }
 0xbc4   :  { %1254 = vst.msk [vmem:[#allocation2 + $0x20] sm:$0xff] %vm33_vm0, %v1251_v27  ;;  %v1264_v11 = vsel %vm33_vm0, %v1251_v27, 0 }
 0xbc5   :  { %v1286_v21 = vand.u32 4294901760, %v1264_v11 }
 0xbc7   :  { %v1287_v28 = vsub.f32 %v1264_v11, %v1286_v21  ;;  %1332 = vmatmul.f32.vlgmr.msrb.gmra.mxu3 %v1286_v21 }
 0xbc8   :  { %1619 = vmatpush.msrb.mxu3 %v2264_v3 }
 0xbc9   :  { %v1288_v20 = vand.u32 4294901760, %v1287_v28  ;;  %1362 = vmatmul.f32.vlgmr.msra.gmra.mxu0 %v1287_v28 }
 0xbca   :  { %1621 = vmatpush.msrb.mxu3 %v2266_v4  ;;  %1648 = vmatpush.msra.mxu0 %v2302_v16 }
 0xbcb   :  { %v1289_v9 = vsub.f32 %v1287_v28, %v1288_v20  ;;  %1389 = vmatmul.f32.vlgmr.msra.gmra.mxu1 %v1288_v20 }
 0xbcc   :  { %1623 = vmatpush.msrb.mxu3 %v2268_v5  ;;  %1679 = vmatpush.msra.mxu1 %v2264_v3 }
 0xbcd   :  { %v1290_v29 = vand.u32 4294901760, %v1289_v9  ;;  %1652 = vmatpush.msra.mxu0 %v2306_v17 }
 0xbce   :  { %1625 = vmatpush.msrb.mxu3 %v2279_v10  ;;  %1681 = vmatpush.msra.mxu1 %v2266_v4 }
 0xbcf   :  { %1291 = vmatmul.f32.vlgmr.msrb.gmra.mxu2 %v1290_v29  ;;  %1447 = vmatmul.f32.vlgmr.msra.gmra.mxu3 %v1286_v21 }
 0xbd0   :  { %1590 = vmatpush.msrb.mxu2 %v2286_v12  ;;  %1683 = vmatpush.msra.mxu1 %v2268_v5 }
 0xbd1   :  { %1656 = vmatpush.msra.mxu0 %v2309_v18  ;;  %1792 = vmatpush.msra.mxu3 %v2324_v23 }
 0xbd2   :  { %1593 = vmatpush.msrb.mxu2 %v2289_v13  ;;  %1685 = vmatpush.msra.mxu1 %v2279_v10 }
 0xbd3   :  { %1660 = vmatpush.msra.mxu0 %v2313_v19  ;;  %1798 = vmatpush.msra.mxu3 %v2327_v24 }
 0xbd4   :  { %1596 = vmatpush.msrb.mxu2 %v2294_v14 }
 0xbd5   :  { %1804 = vmatpush.msra.mxu3 %v2336_v30 }
 0xbd6   :  { %1599 = vmatpush.msrb.mxu2 %v2298_v15 }
 0xbd7   :  { %1422 = vmatmul.f32.vlgmr.msra.gmra.mxu2 %v1286_v21  ;;  %1810 = vmatpush.msra.mxu3 %v2341_v32 }
 0xbd8   :  { %1759 = vmatpush.msra.mxu2 %v2264_v3 }
 0xbda   :  { %1761 = vmatpush.msra.mxu2 %v2266_v4 }
 0xbdc   :  { %1763 = vmatpush.msra.mxu2 %v2268_v5 }
 0xbde   :  { %1765 = vmatpush.msra.mxu2 %v2279_v10 }
 0xc46   :  { %v1363_v33 = vpop.f32.mrf.mxu0 }
 0xc48   :  { %v1390_v30 = vpop.f32.mrf.mxu1 }
 0xc4a   :  { %v1333_v23 = vpop.f32.mrf.mxu3 }
 0xc52   :  { %v1292_v31 = vpop.f32.mrf.mxu2  ;;  %v1448_v39 = vpop.f32.mrf.mxu3 }
 0xc53   :  { %v1334_v24 = vadd.f32 %v1333_v23, %v1292_v31 }
 0xc55   :  { %v1364_v34 = vadd.f32 %v1363_v33, %v1334_v24 }
 0xc57   :  { %v1391_v37 = vadd.f32 %v1390_v30, %v1364_v34 }
 0xc5a   :  { %v1423_v38 = vpop.f32.mrf.mxu2 }
 0xc5b   :  { %v1424_v32 = vadd.f32 %v1423_v38, %v1391_v37 }
 0xc5d   :  { %v1449_v42 = vadd.f32 %v1448_v39, %v1424_v32 }
 0xc5f   :  { %v1451_v43 = vadd.f32 %v1449_v42, %v1263_v41 }
 0xc61   :  { %2099 = vtanh.f32 %v1451_v43  ;;  %v2040_v46 = vmul.f32 -1.442695, %v1451_v43  ;;  %v2043_v43 = vld [vmem:[%s2659_s0 + $0x38] sm:$0xff]  ;;  %s2204_s0 = smov 96  }
 0xc63   :  { %2101 = vpow2.f32 %v2040_v46 }
 0xc67   :  { %v2100_v45 = vpop.eup %2099 }
 0xc68   :  { %1474 = vrot.lane.b32.xlu0 %v2100_v45, %s2202_s3 }
 0xc69   :  { %v2102_v47 = vpop.eup %2101 }
 0xc6a   :  { %v1455_v48 = vadd.f32 1.0, %v2102_v47 }
 0xc6c   :  { %2103 = vrcp.f32 %v1455_v48  ;;  %v1467_v53 = vand.u32 2147483648, %v1455_v48  ;;  %vm1461_vm7 = vweird.f32 %v1455_v48  ;;  %v1465_v44 = vand.u32 2147483647, %v1455_v48 }
 0xc6e   :  { %v1468_v55 = vor.u32 1.1754944e-38, %v1467_v53  ;;  %vm1466_vm9 = vcmp.eq.f32.partialorder %v1465_v44, 8.507059e+37 }
 0xc72   :  { %v2104_v49 = vpop.eup %2103 }
 0xc73   :  { %v1457_v50 = vmul.f32 %v2104_v49, %v1455_v48  ;;  %vm1462_vm6 = vweird.f32 %v2104_v49 }
 0xc74   :  { %vm1463_vm8 = vmor %vm1461_vm7, %vm1462_vm6 }
 0xc75   :  { %v1458_v40 = vsub.f32 1.0, %v1457_v50 }
 0xc77   :  { %v1459_v51 = vmul.f32 %v2104_v49, %v1458_v40 }
 0xc79   :  { %v1460_v52 = vadd.f32 %v2104_v49, %v1459_v51 }
 0xc7b   :  { %v1464_v54 = vsel %vm1463_vm8, %v2104_v49, %v1460_v52 }
 0xc7c   :  { %v1469_v57 = vsel %vm1466_vm9, %v1468_v55, %v1464_v54 }
 0xc7d   :  { %v1472_v60 = vmul.f32 %v1469_v57, %v2557_v8 }
 0xcda   :  { %v1475_v56 = vpop.permute.xlu0 %1474 }
 0xcdb   :  { %v1477_v58 = vmul.f32 %v1475_v56, %v1469_v57 }
 0xcdd   :  { %1479 = vrot.lane.b32.xlu1 %v1477_v58, %s2202_s3 }
 0xce5   :  { %1499 = vperm.xlu1 %2056, %v2041_v59  }
 0xd4f   :  { %v1480_v61 = vpop.permute.xlu1 %1479 }
 0xd50   :  { %v2596_v62 = vadd.f32 %v1480_v61, %v1472_v60 }
 0xd52   :  { %2105 = vtanh.f32 %v2596_v62 }
 0xd57   :  { %v1500_v27 = vpop.permute.xlu1 %1499 }
 0xd58   :  { %v2106_v63 = vpop.eup %2105 }
 0xd59   :  { %1485 = vrot.lane.b32.xlu2 %v2106_v63, %s2202_s3 }
 0xdb3   :  { %v1486_v0 = vpop.permute.xlu2 %1485 }
 0xdb4   :  { %v1488_v1 = vmul.f32 %v1486_v0, %v1469_v57 }
 0xdb6   :  { %1490 = vrot.lane.b32.xlu0 %v1488_v1, %s2203_s23 }
 0xe28   :  { %v1491_v2 = vpop.permute.xlu0 %1490 }
 0xe29   :  { %1494 = vst.msk [vmem:[#allocation2 + $0x28] sm:$0xff] %vm33_vm0, %v1491_v2  ;;  %v1504_v6 = vsel %vm33_vm0, %v1491_v2, 0 }
 0xe2a   :  { %v1526_v7 = vand.u32 4294901760, %v1504_v6 }
 0xe2c   :  { %v1527_v22 = vsub.f32 %v1504_v6, %v1526_v7  ;;  %1572 = vmatmul.f32.vlgmr.msrb.gmra.mxu1 %v1526_v7 }
 0xe2d   :  { %1859 = vmatpush.msrb.mxu1 %v2264_v3 }
 0xe2e   :  { %v1528_v8 = vand.u32 4294901760, %v1527_v22  ;;  %1602 = vmatmul.f32.vlgmr.msrb.gmra.mxu2 %v1527_v22 }
 0xe2f   :  { %1861 = vmatpush.msrb.mxu1 %v2266_v4  ;;  %1888 = vmatpush.msrb.mxu2 %v2302_v16 }
 0xe30   :  { %v1529_v25 = vsub.f32 %v1527_v22, %v1528_v8  ;;  %1629 = vmatmul.f32.vlgmr.msrb.gmra.mxu3 %v1528_v8 }
 0xe31   :  { %1863 = vmatpush.msrb.mxu1 %v2268_v5  ;;  %1919 = vmatpush.msrb.mxu3 %v2264_v3 }
 0xe32   :  { %v1530_v26 = vand.u32 4294901760, %v1529_v25  ;;  %1892 = vmatpush.msrb.mxu2 %v2306_v17 }
 0xe33   :  { %1865 = vmatpush.msrb.mxu1 %v2279_v10  ;;  %1921 = vmatpush.msrb.mxu3 %v2266_v4 }
 0xe34   :  { %1531 = vmatmul.f32.vlgmr.msrb.gmra.mxu0 %v1530_v26  ;;  %1687 = vmatmul.f32.vlgmr.msra.gmra.mxu1 %v1526_v7 }
 0xe35   :  { %1830 = vmatpush.msrb.mxu0 %v2286_v12  ;;  %1923 = vmatpush.msrb.mxu3 %v2268_v5 }
 0xe36   :  { %1896 = vmatpush.msrb.mxu2 %v2309_v18 }
 0xe37   :  { %1833 = vmatpush.msrb.mxu0 %v2289_v13  ;;  %1925 = vmatpush.msrb.mxu3 %v2279_v10  ;;  %v2622_v13 = vld [vmem:[%s2660_s1] ss:$0 sm:$0xff] }
 0xe38   :  { %1900 = vmatpush.msrb.mxu2 %v2313_v19  ;;  %v1502_v10 = vmul.f32 %v2622_v13, %v1500_v27 }
 0xe39   :  { %1836 = vmatpush.msrb.mxu0 %v2294_v14 }
 0xe3b   :  { %1839 = vmatpush.msrb.mxu0 %v2298_v15  ;;  %v2628_v15 = vld [vmem:[%s2661_s2] ss:$0 sm:$0xff] }
 0xe3c   :  { %1662 = vmatmul.f32.vlgmr.msra.gmra.mxu0 %v1526_v7  ;;  %v1503_v21 = vadd.f32 %v2628_v15, %v1502_v10 }
 0xea9   :  { %v1573_v3 = vpop.f32.mrf.mxu1 }
 0xeb1   :  { %v1532_v4 = vpop.f32.mrf.mxu0  ;;  %v1603_v17 = vpop.f32.mrf.mxu2 }
 0xeb2   :  { %v1574_v16 = vadd.f32 %v1573_v3, %v1532_v4  ;;  %v1688_v11 = vpop.f32.mrf.mxu1 }
 0xeb3   :  { %v1630_v5 = vpop.f32.mrf.mxu3 }
 0xeb4   :  { %v1604_v12 = vadd.f32 %v1603_v17, %v1574_v16 }
 0xeb6   :  { %v1631_v18 = vadd.f32 %v1630_v5, %v1604_v12 }
 0xeb9   :  { %v1663_v19 = vpop.f32.mrf.mxu0 }
 0xeba   :  { %v1664_v14 = vadd.f32 %v1663_v19, %v1631_v18 }
 0xebc   :  { %v1689_v28 = vadd.f32 %v1688_v11, %v1664_v14 }
 0xebe   :  { %v1691_v20 = vadd.f32 %v1689_v28, %v1503_v21 }
 0xec0   :  { %2107 = vtanh.f32 %v1691_v20  ;;  %v2042_v29 = vmul.f32 -1.442695, %v1691_v20 }
 0xec2   :  { %2109 = vpow2.f32 %v2042_v29 }
 0xec6   :  { %v2108_v9 = vpop.eup %2107 }
 0xec7   :  { %1714 = vrot.lane.b32.xlu2 %v2108_v9, %s2202_s3 }
 0xec8   :  { %v2110_v23 = vpop.eup %2109 }
 0xec9   :  { %v1695_v31 = vadd.f32 1.0, %v2110_v23 }
 0xecb   :  { %2111 = vrcp.f32 %v1695_v31  ;;  %v1707_v36 = vand.u32 2147483648, %v1695_v31  ;;  %vm1701_vm11 = vweird.f32 %v1695_v31  ;;  %v1705_v37 = vand.u32 2147483647, %v1695_v31 }
 0xecd   :  { %v1708_v32 = vor.u32 1.1754944e-38, %v1707_v36  ;;  %vm1706_vm13 = vcmp.eq.f32.partialorder %v1705_v37, 8.507059e+37 }
 0xed1   :  { %v2112_v24 = vpop.eup %2111 }
 0xed2   :  { %v1697_v33 = vmul.f32 %v2112_v24, %v1695_v31  ;;  %vm1702_vm10 = vweird.f32 %v2112_v24 }
 0xed3   :  { %vm1703_vm12 = vmor %vm1701_vm11, %vm1702_vm10 }
 0xed4   :  { %v1698_v34 = vsub.f32 1.0, %v1697_v33 }
 0xed6   :  { %v1699_v35 = vmul.f32 %v2112_v24, %v1698_v34 }
 0xed8   :  { %v1700_v30 = vadd.f32 %v2112_v24, %v1699_v35 }
 0xeda   :  { %v1704_v38 = vsel %vm1703_vm12, %v2112_v24, %v1700_v30 }
 0xedb   :  { %v1709_v41 = vsel %vm1706_vm13, %v1708_v32, %v1704_v38 }
 0xedc   :  { %v1712_v45 = vmul.f32 %v1709_v41, %v2596_v62 }
 0xf21   :  { %v1715_v39 = vpop.permute.xlu2 %1714 }
 0xf22   :  { %v1717_v42 = vmul.f32 %v1715_v39, %v1709_v41 }
 0xf24   :  { %1719 = vrot.lane.b32.xlu0 %v1717_v42, %s2202_s3 }
 0xf2c   :  { %1739 = vperm.xlu0 %2054, %v2043_v43  }
 0xf96   :  { %v1720_v46 = vpop.permute.xlu0 %1719 }
 0xf97   :  { %v1722_v47 = vadd.f32 %v1720_v46, %v1712_v45 }
 0xf99   :  { %2113 = vtanh.f32 %v1722_v47 }
 0xf9e   :  { %v1740_v61 = vpop.permute.xlu0 %1739 }
 0xf9f   :  { %v2114_v48 = vpop.eup %2113  ;;  %v1742_v63 = vmul.f32 %v2622_v13, %v1740_v61 }
 0xfa0   :  { %1725 = vrot.lane.b32.xlu1 %v2114_v48, %s2202_s3 }
 0xfa1   :  { %v1743_v7 = vadd.f32 %v2628_v15, %v1742_v63 }
0x1012   :  { %v1726_v49 = vpop.permute.xlu1 %1725 }
0x1013   :  { %v1728_v50 = vmul.f32 %v1726_v49, %v1709_v41 }
0x1015   :  { %1730 = vrot.lane.b32.xlu2 %v1728_v50, %s2203_s23 }
0x106f   :  { %v1731_v40 = vpop.permute.xlu2 %1730 }
0x1070   :  { %1734 = vst.msk [vmem:[#allocation2 + $0x30] sm:$0xff] %vm33_vm0, %v1731_v40  ;;  %v1744_v51 = vsel %vm33_vm0, %v1731_v40, 0 }
0x1071   :  { %v1766_v52 = vand.u32 4294901760, %v1744_v51 }
0x1073   :  { %v1767_v53 = vsub.f32 %v1744_v51, %v1766_v52  ;;  %1812 = vmatmul.f32.vlgmr.msra.gmra.mxu3 %v1766_v52 }
0x1075   :  { %v1768_v44 = vand.u32 4294901760, %v1767_v53  ;;  %1842 = vmatmul.f32.vlgmr.msrb.gmra.mxu0 %v1767_v53 }
0x1077   :  { %v1769_v54 = vsub.f32 %v1767_v53, %v1768_v44  ;;  %1869 = vmatmul.f32.vlgmr.msrb.gmra.mxu1 %v1768_v44 }
0x1079   :  { %v1770_v55 = vand.u32 4294901760, %v1769_v54 }
0x107b   :  { %1771 = vmatmul.f32.vlgmr.msra.gmra.mxu2 %v1770_v55  ;;  %1927 = vmatmul.f32.vlgmr.msrb.gmra.mxu3 %v1766_v52 }
0x1083   :  { %1902 = vmatmul.f32.vlgmr.msrb.gmra.mxu2 %v1766_v52 }
0x10f2   :  { %v1843_v59 = vpop.f32.mrf.mxu0 }
0x10f4   :  { %v1870_v62 = vpop.f32.mrf.mxu1 }
0x10f6   :  { %v1813_v56 = vpop.f32.mrf.mxu3 }
0x10fe   :  { %v1772_v57 = vpop.f32.mrf.mxu2  ;;  %v1928_v6 = vpop.f32.mrf.mxu3 }
0x10ff   :  { %v1814_v58 = vadd.f32 %v1813_v56, %v1772_v57 }
0x1101   :  { %v1844_v60 = vadd.f32 %v1843_v59, %v1814_v58 }
0x1103   :  { %v1871_v0 = vadd.f32 %v1870_v62, %v1844_v60 }
0x1106   :  { %v1903_v1 = vpop.f32.mrf.mxu2 }
0x1107   :  { %v1904_v2 = vadd.f32 %v1903_v1, %v1871_v0 }
0x1109   :  { %v1929_v22 = vadd.f32 %v1928_v6, %v1904_v2 }
0x110b   :  { %v1931_v8 = vadd.f32 %v1929_v22, %v1743_v7 }
0x110d   :  { %2115 = vtanh.f32 %v1931_v8  ;;  %v2044_v26 = vmul.f32 -1.442695, %v1931_v8 }
0x110f   :  { %2117 = vpow2.f32 %v2044_v26 }
0x1113   :  { %v2116_v25 = vpop.eup %2115 }
0x1114   :  { %1954 = vrot.lane.b32.xlu1 %v2116_v25, %s2202_s3 }
0x1115   :  { %v2118_v3 = vpop.eup %2117 }
0x1116   :  { %v1935_v4 = vadd.f32 1.0, %v2118_v3 }
0x1118   :  { %2119 = vrcp.f32 %v1935_v4  ;;  %v1947_v13 = vand.u32 2147483648, %v1935_v4  ;;  %vm1941_vm15 = vweird.f32 %v1935_v4  ;;  %v1945_v10 = vand.u32 2147483647, %v1935_v4 }
0x111a   :  { %v1948_v19 = vor.u32 1.1754944e-38, %v1947_v13  ;;  %vm1946_vm2 = vcmp.eq.f32.partialorder %v1945_v10, 8.507059e+37 }
0x111e   :  { %v2120_v16 = vpop.eup %2119 }
0x111f   :  { %v1937_v17 = vmul.f32 %v2120_v16, %v1935_v4  ;;  %vm1942_vm14 = vweird.f32 %v2120_v16 }
0x1120   :  { %vm1943_vm1 = vmor %vm1941_vm15, %vm1942_vm14 }
0x1121   :  { %v1938_v12 = vsub.f32 1.0, %v1937_v17 }
0x1123   :  { %v1939_v27 = vmul.f32 %v2120_v16, %v1938_v12 }
0x1125   :  { %v1940_v5 = vadd.f32 %v2120_v16, %v1939_v27 }
0x1127   :  { %v1944_v18 = vsel %vm1943_vm1, %v2120_v16, %v1940_v5 }
0x1128   :  { %v1949_v11 = vsel %vm1946_vm2, %v1948_v19, %v1944_v18 }
0x1129   :  { %v1952_v21 = vmul.f32 %v1949_v11, %v1722_v47 }
0x1186   :  { %v1955_v14 = vpop.permute.xlu1 %1954 }
0x1187   :  { %v1957_v15 = vmul.f32 %v1955_v14, %v1949_v11 }
0x1189   :  { %1959 = vrot.lane.b32.xlu2 %v1957_v15, %s2202_s3 }
0x11e3   :  { %v1960_v28 = vpop.permute.xlu2 %1959 }
0x11e4   :  { %v1962_v20 = vadd.f32 %v1960_v28, %v1952_v21 }
0x11e6   :  { %2121 = vtanh.f32 %v1962_v20  ;;  %1977 = vrot.lane.b32.xlu2 %v1962_v20, %s2204_s0 }
0x11ec   :  { %v2122_v9 = vpop.eup %2121 }
0x11ed   :  { %1965 = vrot.lane.b32.xlu0 %v2122_v9, %s2202_s3  ;;  %s2207_s3 = smov [#allocation6]  }
0x11ee   :  { %s2010_s25 = sshll.u32 %s2207_s3, 4  ;;  %s2011_s25 = int_to_ptr.vmem [resolvable:$true] %s2010_s25 }
0x1240   :  { %v1978_v29 = vpop.permute.xlu2 %1977 }
0x1241   :  { %1980 = vst.msk [vmem:[#allocation6] sm:$0xff] %vm33_vm0, %v1978_v29 }
0x125f   :  { %v1966_v23 = vpop.permute.xlu0 %1965 }
0x1260   :  { %v1968_v31 = vmul.f32 %v1966_v23, %v1949_v11 }
0x1262   :  { %1970 = vrot.lane.b32.xlu1 %v1968_v31, %s2203_s23  ;;  %s2012_s23 = sshll.u32 %s2667_s8, 4  ;;  %s2013_s23 = int_to_ptr.hbm [resolvable:$true] %s2012_s23 }
0x12d4   :  { %v1971_v24 = vpop.permute.xlu1 %1970 }
0x12d5   :  { %1974 = vst.msk [vmem:[#allocation2 + $0x38] sm:$0xff] %vm33_vm0, %v1971_v24 }
0x12d6   :  { %1975 = vst.msk [vmem:[#allocation4] sm:$0xff] %vm33_vm0, %v1971_v24  ;;  %1993 = dma.vmem_to_hbm [thread:$0]  %s1986_s17, 1024, %s1988_s5, [#allocation3], %s2208_s6, %s2208_s6, %s2209_s28  }
0x12d7   :  { %2004 = dma.vmem_to_hbm [thread:$0]  %s2000_s20, 128, %s2002_s24, [#allocation5]  }
0x12d8   :  { %2015 = dma.vmem_to_hbm [thread:$0]  %s2011_s25, 128, %s2013_s23, [#allocation5]  }
0x12d9   :  { %2197 = dma.done.wait [#allocation3], 1024  }
0x12da   :  { %2198 = vsyncadd [#allocation3], 4294966272 }
0x12db   :  { %2199 = dma.done.wait [#allocation5], 256  }
0x12dc   :  { %2200 = vsyncadd [#allocation5], 4294967040 }
0x12dd   :  { %2028 = vsyncpa [#allocation3], 1 }
0x12de   :  { %2029 = vsyncpa [#allocation5], 1 }

</bundles_post_ra>
